<compile_context>
chip_gen: v5e
topology: v5e:2x2
jax: 0.10.0
libtpu: 0.0.40
codegen_flags: <defaults>
</compile_context>

<pallas_src>
import jax
import jax.numpy as jnp
from jax.experimental import pallas as pl
from jax.experimental.pallas import tpu as pltpu

# --- small hyperparams, structurally consistent with the reference module ---
# (reference: d_model=768, n_heads=8, d_k=d_v=64, d_ff=2048, n_layers=6)
D_MODEL = 64
N_HEADS = 4
D_K = D_V = 8
D_FF = 128
N_LAYERS = 2
VOCAB = 32
MAX_POS = 16
LN_EPS = 1e-5  # PyTorch nn.LayerNorm default


def _layernorm(x, gamma, beta):
    mu = jnp.mean(x, axis=-1, keepdims=True)
    var = jnp.mean((x - mu) ** 2, axis=-1, keepdims=True)
    return (x - mu) * jax.lax.rsqrt(var + LN_EPS) * gamma + beta


# ----------------------------- fused Pallas kernel --------------------------

def gpt_fused_kernel(x_ref, mask_ref, wq_ref, wk_ref, wv_ref, wo_ref,
                     ln1g_ref, ln1b_ref, w1_ref, w2_ref, ln2g_ref, ln2b_ref,
                     pw_ref, pb_ref, logits_ref, attn_ref):
    """Full GPT forward for one batch element (all layers + final projection)."""
    S = x_ref.shape[1]
    H, DK, DV = N_HEADS, D_K, D_V

    x = x_ref[0]                                   # [S, D] f32
    neg = jnp.float32(-1e9)
    scale = jnp.float32(1.0 / (D_K ** 0.5))

    # loop-invariant: hoisted out of the statically unrolled layer loop
    mask_b = jnp.broadcast_to(mask_ref[0][None] > 0.0, (H, S, S))   # [H,S,S] bool

    for l in range(N_LAYERS):                      # static unroll over layers
        # ------------- multi-head self-attention ---------------------------
        xb = x.astype(jnp.bfloat16)                # bf16 MXU operands, f32 acc
        q = jnp.dot(xb, wq_ref[l], preferred_element_type=jnp.float32)  # [S,H*dk]
        k = jnp.dot(xb, wk_ref[l], preferred_element_type=jnp.float32)  # [S,H*dk]
        v = jnp.dot(xb, wv_ref[l], preferred_element_type=jnp.float32)  # [S,H*dv]

        # split heads into a leading batch dim (static lane slices; no x bcast)
        q3 = jnp.stack([q[:, h * DK:(h + 1) * DK] for h in range(H)],
                       axis=0).astype(jnp.bfloat16)                     # [H,S,dk]
        k3 = jnp.stack([k[:, h * DK:(h + 1) * DK] for h in range(H)],
                       axis=0).astype(jnp.bfloat16)                     # [H,S,dk]
        v3 = jnp.stack([v[:, h * DV:(h + 1) * DV] for h in range(H)],
                       axis=0).astype(jnp.bfloat16)                     # [H,S,dv]

        scores = jnp.einsum('hsk,htk->hst', q3, k3,
                            preferred_element_type=jnp.float32) * scale  # [H,S,S]
        scores = jnp.where(mask_b, neg, scores)
        scores = scores - jnp.max(scores, axis=-1, keepdims=True)
        # NOTE: fully-masked rows give a uniform (not NaN) distribution due to
        # the max-subtraction of -1e9; matches the PyTorch softmax behaviour.
        e = jnp.exp(scores)
        attn = e * pl.reciprocal(jnp.sum(e, axis=-1, keepdims=True),
                                 approx=True)                            # [H,S,S]

        # lane-dense attention-map store: one [S, H*S] slab per layer
        attn_ref[0, l] = jnp.concatenate([attn[h] for h in range(H)], axis=1)

        ctx = jnp.einsum('hst,htk->hsk', attn.astype(jnp.bfloat16), v3,
                         preferred_element_type=jnp.float32)             # [H,S,dv]
        ctx2 = jnp.concatenate([ctx[h] for h in range(H)], axis=1)       # [S,H*dv]
        out = jnp.dot(ctx2.astype(jnp.bfloat16), wo_ref[l],
                      preferred_element_type=jnp.float32)                # [S, D]
        x = _layernorm(out + x, ln1g_ref[l], ln1b_ref[l])

        # ------------- position-wise FFN ------------------------------------
        h1 = jnp.maximum(
            jnp.dot(x.astype(jnp.bfloat16), w1_ref[l],
                    preferred_element_type=jnp.float32), 0.0)            # [S,Dff]
        y = jnp.dot(h1.astype(jnp.bfloat16), w2_ref[l],
                    preferred_element_type=jnp.float32)                  # [S, D]
        x = _layernorm(y + x, ln2g_ref[l], ln2b_ref[l])

    # ------------- final projection (fused; no extra launch) ---------------
    logits_ref[0] = (jnp.dot(x.astype(jnp.bfloat16), pw_ref[...],
                             preferred_element_type=jnp.float32)
                     + pb_ref[...])


# ----------------------------- pallas_call wrapper --------------------------

def gpt_forward(params, dec_inputs):
    """Matches GPT.forward: returns (logits [B*S, vocab], [attn per layer])."""
    B, S = dec_inputs.shape
    D, H, L, V = D_MODEL, N_HEADS, N_LAYERS, VOCAB

    # embedding + positional embedding (plain-JAX gather glue)
    pos = jnp.arange(S, dtype=jnp.int32)
    x = params["tgt_emb"][dec_inputs] + params["pos_emb"][pos][None, :, :]

    # attention mask: pad-mask (key token == 0) OR causal subsequence mask
    pad_mask = jnp.broadcast_to((dec_inputs == 0)[:, None, :], (B, S, S))
    subseq = jnp.triu(jnp.ones((S, S), jnp.int32), k=1)[None, :, :]
    mask = ((pad_mask.astype(jnp.int32) + subseq) > 0).astype(jnp.float32)

    wq, wk, wv, wo = params["wq"], params["wk"], params["wv"], params["wo"]
    w1, w2 = params["w1"], params["w2"]
    ln1g, ln1b = params["ln1_g"], params["ln1_b"]
    ln2g, ln2b = params["ln2_g"], params["ln2_b"]
    pw, pb = params["proj_w"], params["proj_b"]

    # rough cost hint for XLA scheduling of the tiny custom call
    flops_layer = (3 * 2 * S * D * (H * D_K)       # q,k,v projections
                   + 2 * H * S * S * D_K           # scores
                   + 2 * H * S * S * D_V           # attn @ v
                   + 2 * S * (H * D_V) * D         # output projection
                   + 2 * 2 * S * D * D_FF)         # ffn
    flops = int(B * (L * flops_layer + 2 * S * D * V))
    transcendentals = int(B * L * H * S * S)
    weight_bytes = 2 * (wq.size + wk.size + wv.size + wo.size
                        + w1.size + w2.size + pw.size)                  # bf16
    small_bytes = 4 * (ln1g.size + ln1b.size + ln2g.size + ln2b.size + pb.size)
    act_bytes = 4 * (x.size + mask.size + B * S * V + B * L * S * H * S)
    bytes_accessed = int(B * (weight_bytes + small_bytes) + act_bytes)

    logits, attn_all = pl.pallas_call(
        gpt_fused_kernel,
        out_shape=(jax.ShapeDtypeStruct((B, S, V), jnp.float32),
                   jax.ShapeDtypeStruct((B, L, S, H * S), jnp.float32)),
        grid=(B,),
        in_specs=[
            pl.BlockSpec((1, S, D), lambda b: (b, 0, 0)),              # x
            pl.BlockSpec((1, S, S), lambda b: (b, 0, 0)),              # mask
            pl.BlockSpec((L, D, H * D_K), lambda b: (0, 0, 0)),        # wq
            pl.BlockSpec((L, D, H * D_K), lambda b: (0, 0, 0)),        # wk
            pl.BlockSpec((L, D, H * D_V), lambda b: (0, 0, 0)),        # wv
            pl.BlockSpec((L, H * D_V, D), lambda b: (0, 0, 0)),        # wo
            pl.BlockSpec((L, 1, D), lambda b: (0, 0, 0)),              # ln1_g
            pl.BlockSpec((L, 1, D), lambda b: (0, 0, 0)),              # ln1_b
            pl.BlockSpec((L, D, D_FF), lambda b: (0, 0, 0)),           # w1
            pl.BlockSpec((L, D_FF, D), lambda b: (0, 0, 0)),           # w2
            pl.BlockSpec((L, 1, D), lambda b: (0, 0, 0)),              # ln2_g
            pl.BlockSpec((L, 1, D), lambda b: (0, 0, 0)),              # ln2_b
            pl.BlockSpec((D, V), lambda b: (0, 0)),                    # proj_w
            pl.BlockSpec((1, V), lambda b: (0, 0)),                    # proj_b
        ],
        out_specs=(pl.BlockSpec((1, S, V), lambda b: (b, 0, 0)),
                   pl.BlockSpec((1, L, S, H * S), lambda b: (b, 0, 0, 0))),
        compiler_params=pltpu.CompilerParams(
            dimension_semantics=("parallel",),
            vmem_limit_bytes=32 * 1024 * 1024),
        cost_estimate=pl.CostEstimate(flops=flops,
                                      transcendentals=transcendentals,
                                      bytes_accessed=bytes_accessed),
    )(x, mask, wq, wk, wv, wo, ln1g, ln1b, w1, w2, ln2g, ln2b, pw, pb)

    # unpack lane-dense [B, L, S, H*S] back to per-layer [B, H, S, S]
    attn_bhss = attn_all.reshape(B, L, S, H, S).transpose(0, 1, 3, 2, 4)
    attns = [attn_bhss[:, l] for l in range(L)]
    return logits.reshape(-1, V), attns


# ----------------------------- params ----------------------------------------

def init_params(key):
    """Pre-stacked (per the perf review) weights; matmul weights stored bf16."""
    ks = jax.random.split(key, 10)
    scale = 0.02
    L, D, H, V = N_LAYERS, D_MODEL, N_HEADS, VOCAB

    def w(k, shape):
        return (scale * jax.random.normal(k, shape, jnp.float32)).astype(jnp.bfloat16)

    return {
        "tgt_emb": scale * jax.random.normal(ks[0], (V, D), jnp.float32),
        "pos_emb": scale * jax.random.normal(ks[1], (MAX_POS, D), jnp.float32),
        "proj_w": w(ks[2], (D, V)),
        "proj_b": scale * jax.random.normal(ks[3], (1, V), jnp.float32),
        "wq": w(ks[4], (L, D, H * D_K)),
        "wk": w(ks[5], (L, D, H * D_K)),
        "wv": w(ks[6], (L, D, H * D_V)),
        "wo": w(ks[7], (L, H * D_V, D)),
        "w1": w(ks[8], (L, D, D_FF)),
        "w2": w(ks[9], (L, D_FF, D)),
        "ln1_g": jnp.ones((L, 1, D), jnp.float32),    # PyTorch LN default init
        "ln1_b": jnp.zeros((L, 1, D), jnp.float32),
        "ln2_g": jnp.ones((L, 1, D), jnp.float32),
        "ln2_b": jnp.zeros((L, 1, D), jnp.float32),
    }


if __name__ == "__main__":
    key = jax.random.PRNGKey(0)
    pkey, tkey = jax.random.split(key)
    params = init_params(pkey)

    B, S = 2, 8
    dec_inputs = jax.random.randint(tkey, (B, S), minval=1, maxval=VOCAB,
                                    dtype=jnp.int32)
    dec_inputs = dec_inputs.at[0, -2:].set(0)  # padding tokens exercise pad mask

    logits, attns = gpt_forward(params, dec_inputs)
    jax.block_until_ready(logits)
    for a in attns:
        jax.block_until_ready(a)

    assert logits.shape == (B * S, VOCAB)
    assert len(attns) == N_LAYERS and attns[0].shape == (B, N_HEADS, S, S)
    print("KERNEL_OK")
</pallas_src>

<mosaic_0001>
module attributes {stable_mosaic.version = 11 : i64} {
  func.func @gpt_fused_kernel(%arg0: i32, %arg1: memref<1x8x64xf32, #tpu.memory_space<vmem>>, %arg2: memref<1x8x8xf32, #tpu.memory_space<vmem>>, %arg3: memref<2x64x32xbf16, #tpu.memory_space<vmem>>, %arg4: memref<2x64x32xbf16, #tpu.memory_space<vmem>>, %arg5: memref<2x64x32xbf16, #tpu.memory_space<vmem>>, %arg6: memref<2x32x64xbf16, #tpu.memory_space<vmem>>, %arg7: memref<2x1x64xf32, #tpu.memory_space<vmem>>, %arg8: memref<2x1x64xf32, #tpu.memory_space<vmem>>, %arg9: memref<2x64x128xbf16, #tpu.memory_space<vmem>>, %arg10: memref<2x128x64xbf16, #tpu.memory_space<vmem>>, %arg11: memref<2x1x64xf32, #tpu.memory_space<vmem>>, %arg12: memref<2x1x64xf32, #tpu.memory_space<vmem>>, %arg13: memref<64x32xbf16, #tpu.memory_space<vmem>>, %arg14: memref<1x32xf32, #tpu.memory_space<vmem>>, %arg15: memref<1x8x32xf32, #tpu.memory_space<vmem>>, %arg16: memref<1x2x8x32xf32, #tpu.memory_space<vmem>>) attributes {dimension_semantics = [#tpu.dimension_semantics<parallel>], iteration_bounds = array<i64: 2>, scalar_prefetch = 0 : i64, scratch_operands = 0 : i64, tpu.core_type = #tpu.core_type<tc>, window_params = [{transform_indices = @transform_0, window_bounds = array<i64: 1, 8, 64>}, {transform_indices = @transform_1, window_bounds = array<i64: 1, 8, 8>}, {pipeline_mode = #tpu.pipeline_mode<synchronous>, transform_indices = @transform_2, window_bounds = array<i64: 2, 64, 32>}, {pipeline_mode = #tpu.pipeline_mode<synchronous>, transform_indices = @transform_3, window_bounds = array<i64: 2, 64, 32>}, {pipeline_mode = #tpu.pipeline_mode<synchronous>, transform_indices = @transform_4, window_bounds = array<i64: 2, 64, 32>}, {pipeline_mode = #tpu.pipeline_mode<synchronous>, transform_indices = @transform_5, window_bounds = array<i64: 2, 32, 64>}, {pipeline_mode = #tpu.pipeline_mode<synchronous>, transform_indices = @transform_6, window_bounds = array<i64: 2, 1, 64>}, {pipeline_mode = #tpu.pipeline_mode<synchronous>, transform_indices = @transform_7, window_bounds = array<i64: 2, 1, 64>}, {pipeline_mode = #tpu.pipeline_mode<synchronous>, transform_indices = @transform_8, window_bounds = array<i64: 2, 64, 128>}, {pipeline_mode = #tpu.pipeline_mode<synchronous>, transform_indices = @transform_9, window_bounds = array<i64: 2, 128, 64>}, {pipeline_mode = #tpu.pipeline_mode<synchronous>, transform_indices = @transform_10, window_bounds = array<i64: 2, 1, 64>}, {pipeline_mode = #tpu.pipeline_mode<synchronous>, transform_indices = @transform_11, window_bounds = array<i64: 2, 1, 64>}, {pipeline_mode = #tpu.pipeline_mode<synchronous>, transform_indices = @transform_12, window_bounds = array<i64: 64, 32>}, {pipeline_mode = #tpu.pipeline_mode<synchronous>, transform_indices = @transform_13, window_bounds = array<i64: 1, 32>}, {transform_indices = @transform_14, window_bounds = array<i64: 1, 8, 32>}, {transform_indices = @transform_15, window_bounds = array<i64: 1, 2, 8, 32>}]} {
    %c0 = arith.constant 0 : index
    %c0_0 = arith.constant 0 : index
    %c0_1 = arith.constant 0 : index
    %0 = vector.load %arg1[%c0, %c0_0, %c0_1] : memref<1x8x64xf32, #tpu.memory_space<vmem>>, vector<1x8x64xf32>
    %1 = vector.shape_cast %0 : vector<1x8x64xf32> to vector<8x64xf32>
    %c0_2 = arith.constant 0 : index
    %c0_3 = arith.constant 0 : index
    %c0_4 = arith.constant 0 : index
    %2 = vector.load %arg2[%c0_2, %c0_3, %c0_4] : memref<1x8x8xf32, #tpu.memory_space<vmem>>, vector<1x8x8xf32>
    %3 = vector.shape_cast %2 : vector<1x8x8xf32> to vector<8x8xf32>
    %4 = vector.shape_cast %3 : vector<8x8xf32> to vector<1x8x8xf32>
    %cst = arith.constant 0.000000e+00 : f32
    %5 = vector.broadcast %cst : f32 to vector<1x8x8xf32>
    %6 = arith.cmpf ogt, %4, %5 : vector<1x8x8xf32>
    %7 = vector.shape_cast %6 : vector<1x8x8xi1> to vector<1x8x8xi1>
    %8 = vector.broadcast %7 : vector<1x8x8xi1> to vector<4x8x8xi1>
    %9 = arith.truncf %1 : vector<8x64xf32> to vector<8x64xbf16>
    %c0_5 = arith.constant 0 : index
    %c0_6 = arith.constant 0 : index
    %c0_7 = arith.constant 0 : index
    %10 = vector.load %arg3[%c0_5, %c0_6, %c0_7] : memref<2x64x32xbf16, #tpu.memory_space<vmem>>, vector<1x64x32xbf16>
    %11 = vector.shape_cast %10 : vector<1x64x32xbf16> to vector<64x32xbf16>
    %cst_8 = arith.constant dense<0.000000e+00> : vector<8x32xf32>
    %12 = tpu.matmul %9, %11, %cst_8 {dimension_numbers = #tpu.dot_dimension_numbers<[1], [0], [0], [1], [0, 0, 1, 1], [], []>} : vector<8x64xbf16>, vector<64x32xbf16>, vector<8x32xf32> -> vector<8x32xf32>
    %c0_9 = arith.constant 0 : index
    %c0_10 = arith.constant 0 : index
    %c0_11 = arith.constant 0 : index
    %13 = vector.load %arg4[%c0_9, %c0_10, %c0_11] : memref<2x64x32xbf16, #tpu.memory_space<vmem>>, vector<1x64x32xbf16>
    %14 = vector.shape_cast %13 : vector<1x64x32xbf16> to vector<64x32xbf16>
    %cst_12 = arith.constant dense<0.000000e+00> : vector<8x32xf32>
    %15 = tpu.matmul %9, %14, %cst_12 {dimension_numbers = #tpu.dot_dimension_numbers<[1], [0], [0], [1], [0, 0, 1, 1], [], []>} : vector<8x64xbf16>, vector<64x32xbf16>, vector<8x32xf32> -> vector<8x32xf32>
    %c0_13 = arith.constant 0 : index
    %c0_14 = arith.constant 0 : index
    %c0_15 = arith.constant 0 : index
    %16 = vector.load %arg5[%c0_13, %c0_14, %c0_15] : memref<2x64x32xbf16, #tpu.memory_space<vmem>>, vector<1x64x32xbf16>
    %17 = vector.shape_cast %16 : vector<1x64x32xbf16> to vector<64x32xbf16>
    %cst_16 = arith.constant dense<0.000000e+00> : vector<8x32xf32>
    %18 = tpu.matmul %9, %17, %cst_16 {dimension_numbers = #tpu.dot_dimension_numbers<[1], [0], [0], [1], [0, 0, 1, 1], [], []>} : vector<8x64xbf16>, vector<64x32xbf16>, vector<8x32xf32> -> vector<8x32xf32>
    %19 = vector.extract_strided_slice %12 {offsets = [0, 0], sizes = [8, 8], strides = [1, 1]} : vector<8x32xf32> to vector<8x8xf32>
    %20 = vector.extract_strided_slice %12 {offsets = [0, 8], sizes = [8, 8], strides = [1, 1]} : vector<8x32xf32> to vector<8x8xf32>
    %21 = vector.extract_strided_slice %12 {offsets = [0, 16], sizes = [8, 8], strides = [1, 1]} : vector<8x32xf32> to vector<8x8xf32>
    %22 = vector.extract_strided_slice %12 {offsets = [0, 24], sizes = [8, 8], strides = [1, 1]} : vector<8x32xf32> to vector<8x8xf32>
    %23 = vector.shape_cast %19 : vector<8x8xf32> to vector<1x8x8xf32>
    %24 = vector.shape_cast %20 : vector<8x8xf32> to vector<1x8x8xf32>
    %25 = vector.shape_cast %21 : vector<8x8xf32> to vector<1x8x8xf32>
    %26 = vector.shape_cast %22 : vector<8x8xf32> to vector<1x8x8xf32>
    %27 = tpu.concatenate %23, %24, %25, %26 in 0 : vector<1x8x8xf32>, vector<1x8x8xf32>, vector<1x8x8xf32>, vector<1x8x8xf32> -> vector<4x8x8xf32>
    %28 = arith.truncf %27 : vector<4x8x8xf32> to vector<4x8x8xbf16>
    %29 = vector.extract_strided_slice %15 {offsets = [0, 0], sizes = [8, 8], strides = [1, 1]} : vector<8x32xf32> to vector<8x8xf32>
    %30 = vector.extract_strided_slice %15 {offsets = [0, 8], sizes = [8, 8], strides = [1, 1]} : vector<8x32xf32> to vector<8x8xf32>
    %31 = vector.extract_strided_slice %15 {offsets = [0, 16], sizes = [8, 8], strides = [1, 1]} : vector<8x32xf32> to vector<8x8xf32>
    %32 = vector.extract_strided_slice %15 {offsets = [0, 24], sizes = [8, 8], strides = [1, 1]} : vector<8x32xf32> to vector<8x8xf32>
    %33 = vector.shape_cast %29 : vector<8x8xf32> to vector<1x8x8xf32>
    %34 = vector.shape_cast %30 : vector<8x8xf32> to vector<1x8x8xf32>
    %35 = vector.shape_cast %31 : vector<8x8xf32> to vector<1x8x8xf32>
    %36 = vector.shape_cast %32 : vector<8x8xf32> to vector<1x8x8xf32>
    %37 = tpu.concatenate %33, %34, %35, %36 in 0 : vector<1x8x8xf32>, vector<1x8x8xf32>, vector<1x8x8xf32>, vector<1x8x8xf32> -> vector<4x8x8xf32>
    %38 = arith.truncf %37 : vector<4x8x8xf32> to vector<4x8x8xbf16>
    %39 = vector.extract_strided_slice %18 {offsets = [0, 0], sizes = [8, 8], strides = [1, 1]} : vector<8x32xf32> to vector<8x8xf32>
    %40 = vector.extract_strided_slice %18 {offsets = [0, 8], sizes = [8, 8], strides = [1, 1]} : vector<8x32xf32> to vector<8x8xf32>
    %41 = vector.extract_strided_slice %18 {offsets = [0, 16], sizes = [8, 8], strides = [1, 1]} : vector<8x32xf32> to vector<8x8xf32>
    %42 = vector.extract_strided_slice %18 {offsets = [0, 24], sizes = [8, 8], strides = [1, 1]} : vector<8x32xf32> to vector<8x8xf32>
    %43 = vector.shape_cast %39 : vector<8x8xf32> to vector<1x8x8xf32>
    %44 = vector.shape_cast %40 : vector<8x8xf32> to vector<1x8x8xf32>
    %45 = vector.shape_cast %41 : vector<8x8xf32> to vector<1x8x8xf32>
    %46 = vector.shape_cast %42 : vector<8x8xf32> to vector<1x8x8xf32>
    %47 = tpu.concatenate %43, %44, %45, %46 in 0 : vector<1x8x8xf32>, vector<1x8x8xf32>, vector<1x8x8xf32>, vector<1x8x8xf32> -> vector<4x8x8xf32>
    %48 = arith.truncf %47 : vector<4x8x8xf32> to vector<4x8x8xbf16>
    "tpu.trace_start"() <{level = 10 : i32, message = "hsk,htk->hst"}> : () -> ()
    %cst_17 = arith.constant dense<0.000000e+00> : vector<4x8x8xf32>
    %49 = tpu.matmul %28, %38, %cst_17 {dimension_numbers = #tpu.dot_dimension_numbers<[2], [2], [1], [1], [0, 0, 0, 1, 1, 1], [0], [0]>} : vector<4x8x8xbf16>, vector<4x8x8xbf16>, vector<4x8x8xf32> -> vector<4x8x8xf32>
    "tpu.trace_stop"() : () -> ()
    %cst_18 = arith.constant 0.353553385 : f32
    %50 = vector.broadcast %cst_18 : f32 to vector<4x8x8xf32>
    %51 = arith.mulf %49, %50 : vector<4x8x8xf32>
    %cst_19 = arith.constant -1.000000e+09 : f32
    %52 = vector.broadcast %cst_19 : f32 to vector<4x8x8xf32>
    %53 = arith.select %8, %52, %51 : vector<4x8x8xi1>, vector<4x8x8xf32>
    %cst_20 = arith.constant dense<0xFF800000> : vector<4x8xf32>
    %54 = vector.multi_reduction <maximumf>, %53, %cst_20 [2] : vector<4x8x8xf32> to vector<4x8xf32>
    %55 = vector.shape_cast %54 : vector<4x8xf32> to vector<4x8x1xf32>
    %56 = vector.broadcast %55 : vector<4x8x1xf32> to vector<4x8x8xf32>
    %57 = arith.subf %53, %56 : vector<4x8x8xf32>
    %58 = math.exp %57 : vector<4x8x8xf32>
    %cst_21 = arith.constant dense<0.000000e+00> : vector<4x8xf32>
    %59 = vector.multi_reduction <add>, %58, %cst_21 [2] : vector<4x8x8xf32> to vector<4x8xf32>
    %60 = vector.shape_cast %59 : vector<4x8xf32> to vector<4x8x1xf32>
    %61 = tpu.reciprocal %60 {approx = true} : vector<4x8x1xf32> -> vector<4x8x1xf32>
    %62 = vector.broadcast %61 : vector<4x8x1xf32> to vector<4x8x8xf32>
    %63 = arith.mulf %58, %62 : vector<4x8x8xf32>
    %64 = vector.extract_strided_slice %63 {offsets = [0, 0, 0], sizes = [1, 8, 8], strides = [1, 1, 1]} : vector<4x8x8xf32> to vector<1x8x8xf32>
    %65 = vector.shape_cast %64 : vector<1x8x8xf32> to vector<8x8xf32>
    %66 = vector.extract_strided_slice %63 {offsets = [1, 0, 0], sizes = [1, 8, 8], strides = [1, 1, 1]} : vector<4x8x8xf32> to vector<1x8x8xf32>
    %67 = vector.shape_cast %66 : vector<1x8x8xf32> to vector<8x8xf32>
    %68 = vector.extract_strided_slice %63 {offsets = [2, 0, 0], sizes = [1, 8, 8], strides = [1, 1, 1]} : vector<4x8x8xf32> to vector<1x8x8xf32>
    %69 = vector.shape_cast %68 : vector<1x8x8xf32> to vector<8x8xf32>
    %70 = vector.extract_strided_slice %63 {offsets = [3, 0, 0], sizes = [1, 8, 8], strides = [1, 1, 1]} : vector<4x8x8xf32> to vector<1x8x8xf32>
    %71 = vector.shape_cast %70 : vector<1x8x8xf32> to vector<8x8xf32>
    %72 = tpu.concatenate %65, %67, %69, %71 in 1 : vector<8x8xf32>, vector<8x8xf32>, vector<8x8xf32>, vector<8x8xf32> -> vector<8x32xf32>
    %c0_22 = arith.constant 0 : index
    %c0_23 = arith.constant 0 : index
    %c0_24 = arith.constant 0 : index
    %c0_25 = arith.constant 0 : index
    %73 = vector.load %arg16[%c0_22, %c0_23, %c0_24, %c0_25] : memref<1x2x8x32xf32, #tpu.memory_space<vmem>>, vector<1x1x8x32xf32>
    %74 = vector.shape_cast %73 : vector<1x1x8x32xf32> to vector<8x32xf32>
    %75 = vector.shape_cast %72 : vector<8x32xf32> to vector<1x1x8x32xf32>
    tpu.vector_store %arg16[%c0_22, %c0_23, %c0_24, %c0_25], %75 {strides = array<i32>} : memref<1x2x8x32xf32, #tpu.memory_space<vmem>>, vector<1x1x8x32xf32>,
    %76 = arith.truncf %63 : vector<4x8x8xf32> to vector<4x8x8xbf16>
    "tpu.trace_start"() <{level = 10 : i32, message = "hst,htk->hsk"}> : () -> ()
    %cst_26 = arith.constant dense<0.000000e+00> : vector<4x8x8xf32>
    %77 = tpu.matmul %76, %48, %cst_26 {dimension_numbers = #tpu.dot_dimension_numbers<[2], [1], [1], [2], [0, 0, 0, 1, 1, 2], [0], [0]>} : vector<4x8x8xbf16>, vector<4x8x8xbf16>, vector<4x8x8xf32> -> vector<4x8x8xf32>
    "tpu.trace_stop"() : () -> ()
    %78 = vector.extract_strided_slice %77 {offsets = [0, 0, 0], sizes = [1, 8, 8], strides = [1, 1, 1]} : vector<4x8x8xf32> to vector<1x8x8xf32>
    %79 = vector.shape_cast %78 : vector<1x8x8xf32> to vector<8x8xf32>
    %80 = vector.extract_strided_slice %77 {offsets = [1, 0, 0], sizes = [1, 8, 8], strides = [1, 1, 1]} : vector<4x8x8xf32> to vector<1x8x8xf32>
    %81 = vector.shape_cast %80 : vector<1x8x8xf32> to vector<8x8xf32>
    %82 = vector.extract_strided_slice %77 {offsets = [2, 0, 0], sizes = [1, 8, 8], strides = [1, 1, 1]} : vector<4x8x8xf32> to vector<1x8x8xf32>
    %83 = vector.shape_cast %82 : vector<1x8x8xf32> to vector<8x8xf32>
    %84 = vector.extract_strided_slice %77 {offsets = [3, 0, 0], sizes = [1, 8, 8], strides = [1, 1, 1]} : vector<4x8x8xf32> to vector<1x8x8xf32>
    %85 = vector.shape_cast %84 : vector<1x8x8xf32> to vector<8x8xf32>
    %86 = tpu.concatenate %79, %81, %83, %85 in 1 : vector<8x8xf32>, vector<8x8xf32>, vector<8x8xf32>, vector<8x8xf32> -> vector<8x32xf32>
    %87 = arith.truncf %86 : vector<8x32xf32> to vector<8x32xbf16>
    %c0_27 = arith.constant 0 : index
    %c0_28 = arith.constant 0 : index
    %c0_29 = arith.constant 0 : index
    %88 = vector.load %arg6[%c0_27, %c0_28, %c0_29] : memref<2x32x64xbf16, #tpu.memory_space<vmem>>, vector<1x32x64xbf16>
    %89 = vector.shape_cast %88 : vector<1x32x64xbf16> to vector<32x64xbf16>
    %cst_30 = arith.constant dense<0.000000e+00> : vector<8x64xf32>
    %90 = tpu.matmul %87, %89, %cst_30 {dimension_numbers = #tpu.dot_dimension_numbers<[1], [0], [0], [1], [0, 0, 1, 1], [], []>} : vector<8x32xbf16>, vector<32x64xbf16>, vector<8x64xf32> -> vector<8x64xf32>
    %91 = arith.addf %90, %1 : vector<8x64xf32>
    %c0_31 = arith.constant 0 : index
    %c0_32 = arith.constant 0 : index
    %c0_33 = arith.constant 0 : index
    %92 = vector.load %arg7[%c0_31, %c0_32, %c0_33] : memref<2x1x64xf32, #tpu.memory_space<vmem>>, vector<1x1x64xf32>
    %93 = vector.shape_cast %92 : vector<1x1x64xf32> to vector<1x64xf32>
    %c0_34 = arith.constant 0 : index
    %c0_35 = arith.constant 0 : index
    %c0_36 = arith.constant 0 : index
    %94 = vector.load %arg8[%c0_34, %c0_35, %c0_36] : memref<2x1x64xf32, #tpu.memory_space<vmem>>, vector<1x1x64xf32>
    %95 = vector.shape_cast %94 : vector<1x1x64xf32> to vector<1x64xf32>
    %cst_37 = arith.constant dense<0.000000e+00> : vector<8xf32>
    %96 = vector.multi_reduction <add>, %91, %cst_37 [1] : vector<8x64xf32> to vector<8xf32>
    %97 = vector.shape_cast %96 : vector<8xf32> to vector<8x1xf32>
    %cst_38 = arith.constant 6.400000e+01 : f32
    %98 = vector.broadcast %cst_38 : f32 to vector<8x1xf32>
    %99 = arith.divf %97, %98 : vector<8x1xf32>
    %100 = vector.broadcast %99 : vector<8x1xf32> to vector<8x64xf32>
    %101 = arith.subf %91, %100 : vector<8x64xf32>
    %102 = arith.mulf %101, %101 : vector<8x64xf32>
    %cst_39 = arith.constant dense<0.000000e+00> : vector<8xf32>
    %103 = vector.multi_reduction <add>, %102, %cst_39 [1] : vector<8x64xf32> to vector<8xf32>
    %104 = vector.shape_cast %103 : vector<8xf32> to vector<8x1xf32>
    %cst_40 = arith.constant 6.400000e+01 : f32
    %105 = vector.broadcast %cst_40 : f32 to vector<8x1xf32>
    %106 = arith.divf %104, %105 : vector<8x1xf32>
    %107 = vector.broadcast %99 : vector<8x1xf32> to vector<8x64xf32>
    %108 = arith.subf %91, %107 : vector<8x64xf32>
    %cst_41 = arith.constant 9.99999974E-6 : f32
    %109 = vector.broadcast %cst_41 : f32 to vector<8x1xf32>
    %110 = arith.addf %106, %109 : vector<8x1xf32>
    %111 = math.rsqrt %110 : vector<8x1xf32>
    %112 = vector.broadcast %111 : vector<8x1xf32> to vector<8x64xf32>
    %113 = arith.mulf %108, %112 : vector<8x64xf32>
    %114 = vector.broadcast %93 : vector<1x64xf32> to vector<8x64xf32>
    %115 = arith.mulf %113, %114 : vector<8x64xf32>
    %116 = vector.broadcast %95 : vector<1x64xf32> to vector<8x64xf32>
    %117 = arith.addf %115, %116 : vector<8x64xf32>
    %118 = arith.truncf %117 : vector<8x64xf32> to vector<8x64xbf16>
    %c0_42 = arith.constant 0 : index
    %c0_43 = arith.constant 0 : index
    %c0_44 = arith.constant 0 : index
    %119 = vector.load %arg9[%c0_42, %c0_43, %c0_44] : memref<2x64x128xbf16, #tpu.memory_space<vmem>>, vector<1x64x128xbf16>
    %120 = vector.shape_cast %119 : vector<1x64x128xbf16> to vector<64x128xbf16>
    %cst_45 = arith.constant dense<0.000000e+00> : vector<8x128xf32>
    %121 = tpu.matmul %118, %120, %cst_45 {dimension_numbers = #tpu.dot_dimension_numbers<[1], [0], [0], [1], [0, 0, 1, 1], [], []>} : vector<8x64xbf16>, vector<64x128xbf16>, vector<8x128xf32> -> vector<8x128xf32>
    %cst_46 = arith.constant 0.000000e+00 : f32
    %122 = vector.broadcast %cst_46 : f32 to vector<8x128xf32>
    %123 = arith.maximumf %121, %122 : vector<8x128xf32>
    %124 = arith.truncf %123 : vector<8x128xf32> to vector<8x128xbf16>
    %c0_47 = arith.constant 0 : index
    %c0_48 = arith.constant 0 : index
    %c0_49 = arith.constant 0 : index
    %125 = vector.load %arg10[%c0_47, %c0_48, %c0_49] : memref<2x128x64xbf16, #tpu.memory_space<vmem>>, vector<1x128x64xbf16>
    %126 = vector.shape_cast %125 : vector<1x128x64xbf16> to vector<128x64xbf16>
    %cst_50 = arith.constant dense<0.000000e+00> : vector<8x64xf32>
    %127 = tpu.matmul %124, %126, %cst_50 {dimension_numbers = #tpu.dot_dimension_numbers<[1], [0], [0], [1], [0, 0, 1, 1], [], []>} : vector<8x128xbf16>, vector<128x64xbf16>, vector<8x64xf32> -> vector<8x64xf32>
    %128 = arith.addf %127, %117 : vector<8x64xf32>
    %c0_51 = arith.constant 0 : index
    %c0_52 = arith.constant 0 : index
    %c0_53 = arith.constant 0 : index
    %129 = vector.load %arg11[%c0_51, %c0_52, %c0_53] : memref<2x1x64xf32, #tpu.memory_space<vmem>>, vector<1x1x64xf32>
    %130 = vector.shape_cast %129 : vector<1x1x64xf32> to vector<1x64xf32>
    %c0_54 = arith.constant 0 : index
    %c0_55 = arith.constant 0 : index
    %c0_56 = arith.constant 0 : index
    %131 = vector.load %arg12[%c0_54, %c0_55, %c0_56] : memref<2x1x64xf32, #tpu.memory_space<vmem>>, vector<1x1x64xf32>
    %132 = vector.shape_cast %131 : vector<1x1x64xf32> to vector<1x64xf32>
    %cst_57 = arith.constant dense<0.000000e+00> : vector<8xf32>
    %133 = vector.multi_reduction <add>, %128, %cst_57 [1] : vector<8x64xf32> to vector<8xf32>
    %134 = vector.shape_cast %133 : vector<8xf32> to vector<8x1xf32>
    %cst_58 = arith.constant 6.400000e+01 : f32
    %135 = vector.broadcast %cst_58 : f32 to vector<8x1xf32>
    %136 = arith.divf %134, %135 : vector<8x1xf32>
    %137 = vector.broadcast %136 : vector<8x1xf32> to vector<8x64xf32>
    %138 = arith.subf %128, %137 : vector<8x64xf32>
    %139 = arith.mulf %138, %138 : vector<8x64xf32>
    %cst_59 = arith.constant dense<0.000000e+00> : vector<8xf32>
    %140 = vector.multi_reduction <add>, %139, %cst_59 [1] : vector<8x64xf32> to vector<8xf32>
    %141 = vector.shape_cast %140 : vector<8xf32> to vector<8x1xf32>
    %cst_60 = arith.constant 6.400000e+01 : f32
    %142 = vector.broadcast %cst_60 : f32 to vector<8x1xf32>
    %143 = arith.divf %141, %142 : vector<8x1xf32>
    %144 = vector.broadcast %136 : vector<8x1xf32> to vector<8x64xf32>
    %145 = arith.subf %128, %144 : vector<8x64xf32>
    %cst_61 = arith.constant 9.99999974E-6 : f32
    %146 = vector.broadcast %cst_61 : f32 to vector<8x1xf32>
    %147 = arith.addf %143, %146 : vector<8x1xf32>
    %148 = math.rsqrt %147 : vector<8x1xf32>
    %149 = vector.broadcast %148 : vector<8x1xf32> to vector<8x64xf32>
    %150 = arith.mulf %145, %149 : vector<8x64xf32>
    %151 = vector.broadcast %130 : vector<1x64xf32> to vector<8x64xf32>
    %152 = arith.mulf %150, %151 : vector<8x64xf32>
    %153 = vector.broadcast %132 : vector<1x64xf32> to vector<8x64xf32>
    %154 = arith.addf %152, %153 : vector<8x64xf32>
    %155 = arith.truncf %154 : vector<8x64xf32> to vector<8x64xbf16>
    %c1 = arith.constant 1 : index
    %c0_62 = arith.constant 0 : index
    %c0_63 = arith.constant 0 : index
    %156 = vector.load %arg3[%c1, %c0_62, %c0_63] : memref<2x64x32xbf16, #tpu.memory_space<vmem>>, vector<1x64x32xbf16>
    %157 = vector.shape_cast %156 : vector<1x64x32xbf16> to vector<64x32xbf16>
    %cst_64 = arith.constant dense<0.000000e+00> : vector<8x32xf32>
    %158 = tpu.matmul %155, %157, %cst_64 {dimension_numbers = #tpu.dot_dimension_numbers<[1], [0], [0], [1], [0, 0, 1, 1], [], []>} : vector<8x64xbf16>, vector<64x32xbf16>, vector<8x32xf32> -> vector<8x32xf32>
    %c1_65 = arith.constant 1 : index
    %c0_66 = arith.constant 0 : index
    %c0_67 = arith.constant 0 : index
    %159 = vector.load %arg4[%c1_65, %c0_66, %c0_67] : memref<2x64x32xbf16, #tpu.memory_space<vmem>>, vector<1x64x32xbf16>
    %160 = vector.shape_cast %159 : vector<1x64x32xbf16> to vector<64x32xbf16>
    %cst_68 = arith.constant dense<0.000000e+00> : vector<8x32xf32>
    %161 = tpu.matmul %155, %160, %cst_68 {dimension_numbers = #tpu.dot_dimension_numbers<[1], [0], [0], [1], [0, 0, 1, 1], [], []>} : vector<8x64xbf16>, vector<64x32xbf16>, vector<8x32xf32> -> vector<8x32xf32>
    %c1_69 = arith.constant 1 : index
    %c0_70 = arith.constant 0 : index
    %c0_71 = arith.constant 0 : index
    %162 = vector.load %arg5[%c1_69, %c0_70, %c0_71] : memref<2x64x32xbf16, #tpu.memory_space<vmem>>, vector<1x64x32xbf16>
    %163 = vector.shape_cast %162 : vector<1x64x32xbf16> to vector<64x32xbf16>
    %cst_72 = arith.constant dense<0.000000e+00> : vector<8x32xf32>
    %164 = tpu.matmul %155, %163, %cst_72 {dimension_numbers = #tpu.dot_dimension_numbers<[1], [0], [0], [1], [0, 0, 1, 1], [], []>} : vector<8x64xbf16>, vector<64x32xbf16>, vector<8x32xf32> -> vector<8x32xf32>
    %165 = vector.extract_strided_slice %158 {offsets = [0, 0], sizes = [8, 8], strides = [1, 1]} : vector<8x32xf32> to vector<8x8xf32>
    %166 = vector.extract_strided_slice %158 {offsets = [0, 8], sizes = [8, 8], strides = [1, 1]} : vector<8x32xf32> to vector<8x8xf32>
    %167 = vector.extract_strided_slice %158 {offsets = [0, 16], sizes = [8, 8], strides = [1, 1]} : vector<8x32xf32> to vector<8x8xf32>
    %168 = vector.extract_strided_slice %158 {offsets = [0, 24], sizes = [8, 8], strides = [1, 1]} : vector<8x32xf32> to vector<8x8xf32>
    %169 = vector.shape_cast %165 : vector<8x8xf32> to vector<1x8x8xf32>
    %170 = vector.shape_cast %166 : vector<8x8xf32> to vector<1x8x8xf32>
    %171 = vector.shape_cast %167 : vector<8x8xf32> to vector<1x8x8xf32>
    %172 = vector.shape_cast %168 : vector<8x8xf32> to vector<1x8x8xf32>
    %173 = tpu.concatenate %169, %170, %171, %172 in 0 : vector<1x8x8xf32>, vector<1x8x8xf32>, vector<1x8x8xf32>, vector<1x8x8xf32> -> vector<4x8x8xf32>
    %174 = arith.truncf %173 : vector<4x8x8xf32> to vector<4x8x8xbf16>
    %175 = vector.extract_strided_slice %161 {offsets = [0, 0], sizes = [8, 8], strides = [1, 1]} : vector<8x32xf32> to vector<8x8xf32>
    %176 = vector.extract_strided_slice %161 {offsets = [0, 8], sizes = [8, 8], strides = [1, 1]} : vector<8x32xf32> to vector<8x8xf32>
    %177 = vector.extract_strided_slice %161 {offsets = [0, 16], sizes = [8, 8], strides = [1, 1]} : vector<8x32xf32> to vector<8x8xf32>
    %178 = vector.extract_strided_slice %161 {offsets = [0, 24], sizes = [8, 8], strides = [1, 1]} : vector<8x32xf32> to vector<8x8xf32>
    %179 = vector.shape_cast %175 : vector<8x8xf32> to vector<1x8x8xf32>
    %180 = vector.shape_cast %176 : vector<8x8xf32> to vector<1x8x8xf32>
    %181 = vector.shape_cast %177 : vector<8x8xf32> to vector<1x8x8xf32>
    %182 = vector.shape_cast %178 : vector<8x8xf32> to vector<1x8x8xf32>
    %183 = tpu.concatenate %179, %180, %181, %182 in 0 : vector<1x8x8xf32>, vector<1x8x8xf32>, vector<1x8x8xf32>, vector<1x8x8xf32> -> vector<4x8x8xf32>
    %184 = arith.truncf %183 : vector<4x8x8xf32> to vector<4x8x8xbf16>
    %185 = vector.extract_strided_slice %164 {offsets = [0, 0], sizes = [8, 8], strides = [1, 1]} : vector<8x32xf32> to vector<8x8xf32>
    %186 = vector.extract_strided_slice %164 {offsets = [0, 8], sizes = [8, 8], strides = [1, 1]} : vector<8x32xf32> to vector<8x8xf32>
    %187 = vector.extract_strided_slice %164 {offsets = [0, 16], sizes = [8, 8], strides = [1, 1]} : vector<8x32xf32> to vector<8x8xf32>
    %188 = vector.extract_strided_slice %164 {offsets = [0, 24], sizes = [8, 8], strides = [1, 1]} : vector<8x32xf32> to vector<8x8xf32>
    %189 = vector.shape_cast %185 : vector<8x8xf32> to vector<1x8x8xf32>
    %190 = vector.shape_cast %186 : vector<8x8xf32> to vector<1x8x8xf32>
    %191 = vector.shape_cast %187 : vector<8x8xf32> to vector<1x8x8xf32>
    %192 = vector.shape_cast %188 : vector<8x8xf32> to vector<1x8x8xf32>
    %193 = tpu.concatenate %189, %190, %191, %192 in 0 : vector<1x8x8xf32>, vector<1x8x8xf32>, vector<1x8x8xf32>, vector<1x8x8xf32> -> vector<4x8x8xf32>
    %194 = arith.truncf %193 : vector<4x8x8xf32> to vector<4x8x8xbf16>
    "tpu.trace_start"() <{level = 10 : i32, message = "hsk,htk->hst"}> : () -> ()
    %cst_73 = arith.constant dense<0.000000e+00> : vector<4x8x8xf32>
    %195 = tpu.matmul %174, %184, %cst_73 {dimension_numbers = #tpu.dot_dimension_numbers<[2], [2], [1], [1], [0, 0, 0, 1, 1, 1], [0], [0]>} : vector<4x8x8xbf16>, vector<4x8x8xbf16>, vector<4x8x8xf32> -> vector<4x8x8xf32>
    "tpu.trace_stop"() : () -> ()
    %cst_74 = arith.constant 0.353553385 : f32
    %196 = vector.broadcast %cst_74 : f32 to vector<4x8x8xf32>
    %197 = arith.mulf %195, %196 : vector<4x8x8xf32>
    %cst_75 = arith.constant -1.000000e+09 : f32
    %198 = vector.broadcast %cst_75 : f32 to vector<4x8x8xf32>
    %199 = arith.select %8, %198, %197 : vector<4x8x8xi1>, vector<4x8x8xf32>
    %cst_76 = arith.constant dense<0xFF800000> : vector<4x8xf32>
    %200 = vector.multi_reduction <maximumf>, %199, %cst_76 [2] : vector<4x8x8xf32> to vector<4x8xf32>
    %201 = vector.shape_cast %200 : vector<4x8xf32> to vector<4x8x1xf32>
    %202 = vector.broadcast %201 : vector<4x8x1xf32> to vector<4x8x8xf32>
    %203 = arith.subf %199, %202 : vector<4x8x8xf32>
    %204 = math.exp %203 : vector<4x8x8xf32>
    %cst_77 = arith.constant dense<0.000000e+00> : vector<4x8xf32>
    %205 = vector.multi_reduction <add>, %204, %cst_77 [2] : vector<4x8x8xf32> to vector<4x8xf32>
    %206 = vector.shape_cast %205 : vector<4x8xf32> to vector<4x8x1xf32>
    %207 = tpu.reciprocal %206 {approx = true} : vector<4x8x1xf32> -> vector<4x8x1xf32>
    %208 = vector.broadcast %207 : vector<4x8x1xf32> to vector<4x8x8xf32>
    %209 = arith.mulf %204, %208 : vector<4x8x8xf32>
    %210 = vector.extract_strided_slice %209 {offsets = [0, 0, 0], sizes = [1, 8, 8], strides = [1, 1, 1]} : vector<4x8x8xf32> to vector<1x8x8xf32>
    %211 = vector.shape_cast %210 : vector<1x8x8xf32> to vector<8x8xf32>
    %212 = vector.extract_strided_slice %209 {offsets = [1, 0, 0], sizes = [1, 8, 8], strides = [1, 1, 1]} : vector<4x8x8xf32> to vector<1x8x8xf32>
    %213 = vector.shape_cast %212 : vector<1x8x8xf32> to vector<8x8xf32>
    %214 = vector.extract_strided_slice %209 {offsets = [2, 0, 0], sizes = [1, 8, 8], strides = [1, 1, 1]} : vector<4x8x8xf32> to vector<1x8x8xf32>
    %215 = vector.shape_cast %214 : vector<1x8x8xf32> to vector<8x8xf32>
    %216 = vector.extract_strided_slice %209 {offsets = [3, 0, 0], sizes = [1, 8, 8], strides = [1, 1, 1]} : vector<4x8x8xf32> to vector<1x8x8xf32>
    %217 = vector.shape_cast %216 : vector<1x8x8xf32> to vector<8x8xf32>
    %218 = tpu.concatenate %211, %213, %215, %217 in 1 : vector<8x8xf32>, vector<8x8xf32>, vector<8x8xf32>, vector<8x8xf32> -> vector<8x32xf32>
    %c0_78 = arith.constant 0 : index
    %c1_79 = arith.constant 1 : index
    %c0_80 = arith.constant 0 : index
    %c0_81 = arith.constant 0 : index
    %219 = vector.load %arg16[%c0_78, %c1_79, %c0_80, %c0_81] : memref<1x2x8x32xf32, #tpu.memory_space<vmem>>, vector<1x1x8x32xf32>
    %220 = vector.shape_cast %219 : vector<1x1x8x32xf32> to vector<8x32xf32>
    %221 = vector.shape_cast %218 : vector<8x32xf32> to vector<1x1x8x32xf32>
    tpu.vector_store %arg16[%c0_78, %c1_79, %c0_80, %c0_81], %221 {strides = array<i32>} : memref<1x2x8x32xf32, #tpu.memory_space<vmem>>, vector<1x1x8x32xf32>,
    %222 = arith.truncf %209 : vector<4x8x8xf32> to vector<4x8x8xbf16>
    "tpu.trace_start"() <{level = 10 : i32, message = "hst,htk->hsk"}> : () -> ()
    %cst_82 = arith.constant dense<0.000000e+00> : vector<4x8x8xf32>
    %223 = tpu.matmul %222, %194, %cst_82 {dimension_numbers = #tpu.dot_dimension_numbers<[2], [1], [1], [2], [0, 0, 0, 1, 1, 2], [0], [0]>} : vector<4x8x8xbf16>, vector<4x8x8xbf16>, vector<4x8x8xf32> -> vector<4x8x8xf32>
    "tpu.trace_stop"() : () -> ()
    %224 = vector.extract_strided_slice %223 {offsets = [0, 0, 0], sizes = [1, 8, 8], strides = [1, 1, 1]} : vector<4x8x8xf32> to vector<1x8x8xf32>
    %225 = vector.shape_cast %224 : vector<1x8x8xf32> to vector<8x8xf32>
    %226 = vector.extract_strided_slice %223 {offsets = [1, 0, 0], sizes = [1, 8, 8], strides = [1, 1, 1]} : vector<4x8x8xf32> to vector<1x8x8xf32>
    %227 = vector.shape_cast %226 : vector<1x8x8xf32> to vector<8x8xf32>
    %228 = vector.extract_strided_slice %223 {offsets = [2, 0, 0], sizes = [1, 8, 8], strides = [1, 1, 1]} : vector<4x8x8xf32> to vector<1x8x8xf32>
    %229 = vector.shape_cast %228 : vector<1x8x8xf32> to vector<8x8xf32>
    %230 = vector.extract_strided_slice %223 {offsets = [3, 0, 0], sizes = [1, 8, 8], strides = [1, 1, 1]} : vector<4x8x8xf32> to vector<1x8x8xf32>
    %231 = vector.shape_cast %230 : vector<1x8x8xf32> to vector<8x8xf32>
    %232 = tpu.concatenate %225, %227, %229, %231 in 1 : vector<8x8xf32>, vector<8x8xf32>, vector<8x8xf32>, vector<8x8xf32> -> vector<8x32xf32>
    %233 = arith.truncf %232 : vector<8x32xf32> to vector<8x32xbf16>
    %c1_83 = arith.constant 1 : index
    %c0_84 = arith.constant 0 : index
    %c0_85 = arith.constant 0 : index
    %234 = vector.load %arg6[%c1_83, %c0_84, %c0_85] : memref<2x32x64xbf16, #tpu.memory_space<vmem>>, vector<1x32x64xbf16>
    %235 = vector.shape_cast %234 : vector<1x32x64xbf16> to vector<32x64xbf16>
    %cst_86 = arith.constant dense<0.000000e+00> : vector<8x64xf32>
    %236 = tpu.matmul %233, %235, %cst_86 {dimension_numbers = #tpu.dot_dimension_numbers<[1], [0], [0], [1], [0, 0, 1, 1], [], []>} : vector<8x32xbf16>, vector<32x64xbf16>, vector<8x64xf32> -> vector<8x64xf32>
    %237 = arith.addf %236, %154 : vector<8x64xf32>
    %c1_87 = arith.constant 1 : index
    %c0_88 = arith.constant 0 : index
    %c0_89 = arith.constant 0 : index
    %238 = vector.load %arg7[%c1_87, %c0_88, %c0_89] : memref<2x1x64xf32, #tpu.memory_space<vmem>>, vector<1x1x64xf32>
    %239 = vector.shape_cast %238 : vector<1x1x64xf32> to vector<1x64xf32>
    %c1_90 = arith.constant 1 : index
    %c0_91 = arith.constant 0 : index
    %c0_92 = arith.constant 0 : index
    %240 = vector.load %arg8[%c1_90, %c0_91, %c0_92] : memref<2x1x64xf32, #tpu.memory_space<vmem>>, vector<1x1x64xf32>
    %241 = vector.shape_cast %240 : vector<1x1x64xf32> to vector<1x64xf32>
    %cst_93 = arith.constant dense<0.000000e+00> : vector<8xf32>
    %242 = vector.multi_reduction <add>, %237, %cst_93 [1] : vector<8x64xf32> to vector<8xf32>
    %243 = vector.shape_cast %242 : vector<8xf32> to vector<8x1xf32>
    %cst_94 = arith.constant 6.400000e+01 : f32
    %244 = vector.broadcast %cst_94 : f32 to vector<8x1xf32>
    %245 = arith.divf %243, %244 : vector<8x1xf32>
    %246 = vector.broadcast %245 : vector<8x1xf32> to vector<8x64xf32>
    %247 = arith.subf %237, %246 : vector<8x64xf32>
    %248 = arith.mulf %247, %247 : vector<8x64xf32>
    %cst_95 = arith.constant dense<0.000000e+00> : vector<8xf32>
    %249 = vector.multi_reduction <add>, %248, %cst_95 [1] : vector<8x64xf32> to vector<8xf32>
    %250 = vector.shape_cast %249 : vector<8xf32> to vector<8x1xf32>
    %cst_96 = arith.constant 6.400000e+01 : f32
    %251 = vector.broadcast %cst_96 : f32 to vector<8x1xf32>
    %252 = arith.divf %250, %251 : vector<8x1xf32>
    %253 = vector.broadcast %245 : vector<8x1xf32> to vector<8x64xf32>
    %254 = arith.subf %237, %253 : vector<8x64xf32>
    %cst_97 = arith.constant 9.99999974E-6 : f32
    %255 = vector.broadcast %cst_97 : f32 to vector<8x1xf32>
    %256 = arith.addf %252, %255 : vector<8x1xf32>
    %257 = math.rsqrt %256 : vector<8x1xf32>
    %258 = vector.broadcast %257 : vector<8x1xf32> to vector<8x64xf32>
    %259 = arith.mulf %254, %258 : vector<8x64xf32>
    %260 = vector.broadcast %239 : vector<1x64xf32> to vector<8x64xf32>
    %261 = arith.mulf %259, %260 : vector<8x64xf32>
    %262 = vector.broadcast %241 : vector<1x64xf32> to vector<8x64xf32>
    %263 = arith.addf %261, %262 : vector<8x64xf32>
    %264 = arith.truncf %263 : vector<8x64xf32> to vector<8x64xbf16>
    %c1_98 = arith.constant 1 : index
    %c0_99 = arith.constant 0 : index
    %c0_100 = arith.constant 0 : index
    %265 = vector.load %arg9[%c1_98, %c0_99, %c0_100] : memref<2x64x128xbf16, #tpu.memory_space<vmem>>, vector<1x64x128xbf16>
    %266 = vector.shape_cast %265 : vector<1x64x128xbf16> to vector<64x128xbf16>
    %cst_101 = arith.constant dense<0.000000e+00> : vector<8x128xf32>
    %267 = tpu.matmul %264, %266, %cst_101 {dimension_numbers = #tpu.dot_dimension_numbers<[1], [0], [0], [1], [0, 0, 1, 1], [], []>} : vector<8x64xbf16>, vector<64x128xbf16>, vector<8x128xf32> -> vector<8x128xf32>
    %cst_102 = arith.constant 0.000000e+00 : f32
    %268 = vector.broadcast %cst_102 : f32 to vector<8x128xf32>
    %269 = arith.maximumf %267, %268 : vector<8x128xf32>
    %270 = arith.truncf %269 : vector<8x128xf32> to vector<8x128xbf16>
    %c1_103 = arith.constant 1 : index
    %c0_104 = arith.constant 0 : index
    %c0_105 = arith.constant 0 : index
    %271 = vector.load %arg10[%c1_103, %c0_104, %c0_105] : memref<2x128x64xbf16, #tpu.memory_space<vmem>>, vector<1x128x64xbf16>
    %272 = vector.shape_cast %271 : vector<1x128x64xbf16> to vector<128x64xbf16>
    %cst_106 = arith.constant dense<0.000000e+00> : vector<8x64xf32>
    %273 = tpu.matmul %270, %272, %cst_106 {dimension_numbers = #tpu.dot_dimension_numbers<[1], [0], [0], [1], [0, 0, 1, 1], [], []>} : vector<8x128xbf16>, vector<128x64xbf16>, vector<8x64xf32> -> vector<8x64xf32>
    %274 = arith.addf %273, %263 : vector<8x64xf32>
    %c1_107 = arith.constant 1 : index
    %c0_108 = arith.constant 0 : index
    %c0_109 = arith.constant 0 : index
    %275 = vector.load %arg11[%c1_107, %c0_108, %c0_109] : memref<2x1x64xf32, #tpu.memory_space<vmem>>, vector<1x1x64xf32>
    %276 = vector.shape_cast %275 : vector<1x1x64xf32> to vector<1x64xf32>
    %c1_110 = arith.constant 1 : index
    %c0_111 = arith.constant 0 : index
    %c0_112 = arith.constant 0 : index
    %277 = vector.load %arg12[%c1_110, %c0_111, %c0_112] : memref<2x1x64xf32, #tpu.memory_space<vmem>>, vector<1x1x64xf32>
    %278 = vector.shape_cast %277 : vector<1x1x64xf32> to vector<1x64xf32>
    %cst_113 = arith.constant dense<0.000000e+00> : vector<8xf32>
    %279 = vector.multi_reduction <add>, %274, %cst_113 [1] : vector<8x64xf32> to vector<8xf32>
    %280 = vector.shape_cast %279 : vector<8xf32> to vector<8x1xf32>
    %cst_114 = arith.constant 6.400000e+01 : f32
    %281 = vector.broadcast %cst_114 : f32 to vector<8x1xf32>
    %282 = arith.divf %280, %281 : vector<8x1xf32>
    %283 = vector.broadcast %282 : vector<8x1xf32> to vector<8x64xf32>
    %284 = arith.subf %274, %283 : vector<8x64xf32>
    %285 = arith.mulf %284, %284 : vector<8x64xf32>
    %cst_115 = arith.constant dense<0.000000e+00> : vector<8xf32>
    %286 = vector.multi_reduction <add>, %285, %cst_115 [1] : vector<8x64xf32> to vector<8xf32>
    %287 = vector.shape_cast %286 : vector<8xf32> to vector<8x1xf32>
    %cst_116 = arith.constant 6.400000e+01 : f32
    %288 = vector.broadcast %cst_116 : f32 to vector<8x1xf32>
    %289 = arith.divf %287, %288 : vector<8x1xf32>
    %290 = vector.broadcast %282 : vector<8x1xf32> to vector<8x64xf32>
    %291 = arith.subf %274, %290 : vector<8x64xf32>
    %cst_117 = arith.constant 9.99999974E-6 : f32
    %292 = vector.broadcast %cst_117 : f32 to vector<8x1xf32>
    %293 = arith.addf %289, %292 : vector<8x1xf32>
    %294 = math.rsqrt %293 : vector<8x1xf32>
    %295 = vector.broadcast %294 : vector<8x1xf32> to vector<8x64xf32>
    %296 = arith.mulf %291, %295 : vector<8x64xf32>
    %297 = vector.broadcast %276 : vector<1x64xf32> to vector<8x64xf32>
    %298 = arith.mulf %296, %297 : vector<8x64xf32>
    %299 = vector.broadcast %278 : vector<1x64xf32> to vector<8x64xf32>
    %300 = arith.addf %298, %299 : vector<8x64xf32>
    %301 = arith.truncf %300 : vector<8x64xf32> to vector<8x64xbf16>
    %c0_118 = arith.constant 0 : index
    %c0_119 = arith.constant 0 : index
    %302 = vector.load %arg13[%c0_118, %c0_119] : memref<64x32xbf16, #tpu.memory_space<vmem>>, vector<64x32xbf16>
    %cst_120 = arith.constant dense<0.000000e+00> : vector<8x32xf32>
    %303 = tpu.matmul %301, %302, %cst_120 {dimension_numbers = #tpu.dot_dimension_numbers<[1], [0], [0], [1], [0, 0, 1, 1], [], []>} : vector<8x64xbf16>, vector<64x32xbf16>, vector<8x32xf32> -> vector<8x32xf32>
    %c0_121 = arith.constant 0 : index
    %c0_122 = arith.constant 0 : index
    %304 = vector.load %arg14[%c0_121, %c0_122] : memref<1x32xf32, #tpu.memory_space<vmem>>, vector<1x32xf32>
    %305 = vector.broadcast %304 : vector<1x32xf32> to vector<8x32xf32>
    %306 = arith.addf %303, %305 : vector<8x32xf32>
    %c0_123 = arith.constant 0 : index
    %c0_124 = arith.constant 0 : index
    %c0_125 = arith.constant 0 : index
    %307 = vector.load %arg15[%c0_123, %c0_124, %c0_125] : memref<1x8x32xf32, #tpu.memory_space<vmem>>, vector<1x8x32xf32>
    %308 = vector.shape_cast %307 : vector<1x8x32xf32> to vector<8x32xf32>
    %309 = vector.shape_cast %306 : vector<8x32xf32> to vector<1x8x32xf32>
    tpu.vector_store %arg15[%c0_123, %c0_124, %c0_125], %309 {strides = array<i32>} : memref<1x8x32xf32, #tpu.memory_space<vmem>>, vector<1x8x32xf32>,
    return
  }
  func.func @transform_0(%arg0: i32) -> (i32, i32, i32) {
    %c0_i32 = arith.constant 0 : i32
    %c0_i32_0 = arith.constant 0 : i32
    %c0_i32_1 = arith.constant 0 : i32
    return %arg0, %c0_i32, %c0_i32_0 : i32, i32, i32
  }
  func.func @transform_1(%arg0: i32) -> (i32, i32, i32) {
    %c0_i32 = arith.constant 0 : i32
    %c0_i32_0 = arith.constant 0 : i32
    %c0_i32_1 = arith.constant 0 : i32
    return %arg0, %c0_i32, %c0_i32_0 : i32, i32, i32
  }
  func.func @transform_2(%arg0: i32) -> (i32, i32, i32) {
    %c0_i32 = arith.constant 0 : i32
    %c0_i32_0 = arith.constant 0 : i32
    %c0_i32_1 = arith.constant 0 : i32
    %c0_i32_2 = arith.constant 0 : i32
    return %c0_i32, %c0_i32_0, %c0_i32_1 : i32, i32, i32
  }
  func.func @transform_3(%arg0: i32) -> (i32, i32, i32) {
    %c0_i32 = arith.constant 0 : i32
    %c0_i32_0 = arith.constant 0 : i32
    %c0_i32_1 = arith.constant 0 : i32
    %c0_i32_2 = arith.constant 0 : i32
    return %c0_i32, %c0_i32_0, %c0_i32_1 : i32, i32, i32
  }
  func.func @transform_4(%arg0: i32) -> (i32, i32, i32) {
    %c0_i32 = arith.constant 0 : i32
    %c0_i32_0 = arith.constant 0 : i32
    %c0_i32_1 = arith.constant 0 : i32
    %c0_i32_2 = arith.constant 0 : i32
    return %c0_i32, %c0_i32_0, %c0_i32_1 : i32, i32, i32
  }
  func.func @transform_5(%arg0: i32) -> (i32, i32, i32) {
    %c0_i32 = arith.constant 0 : i32
    %c0_i32_0 = arith.constant 0 : i32
    %c0_i32_1 = arith.constant 0 : i32
    %c0_i32_2 = arith.constant 0 : i32
    return %c0_i32, %c0_i32_0, %c0_i32_1 : i32, i32, i32
  }
  func.func @transform_6(%arg0: i32) -> (i32, i32, i32) {
    %c0_i32 = arith.constant 0 : i32
    %c0_i32_0 = arith.constant 0 : i32
    %c0_i32_1 = arith.constant 0 : i32
    %c0_i32_2 = arith.constant 0 : i32
    return %c0_i32, %c0_i32_0, %c0_i32_1 : i32, i32, i32
  }
  func.func @transform_7(%arg0: i32) -> (i32, i32, i32) {
    %c0_i32 = arith.constant 0 : i32
    %c0_i32_0 = arith.constant 0 : i32
    %c0_i32_1 = arith.constant 0 : i32
    %c0_i32_2 = arith.constant 0 : i32
    return %c0_i32, %c0_i32_0, %c0_i32_1 : i32, i32, i32
  }
  func.func @transform_8(%arg0: i32) -> (i32, i32, i32) {
    %c0_i32 = arith.constant 0 : i32
    %c0_i32_0 = arith.constant 0 : i32
    %c0_i32_1 = arith.constant 0 : i32
    %c0_i32_2 = arith.constant 0 : i32
    return %c0_i32, %c0_i32_0, %c0_i32_1 : i32, i32, i32
  }
  func.func @transform_9(%arg0: i32) -> (i32, i32, i32) {
    %c0_i32 = arith.constant 0 : i32
    %c0_i32_0 = arith.constant 0 : i32
    %c0_i32_1 = arith.constant 0 : i32
    %c0_i32_2 = arith.constant 0 : i32
    return %c0_i32, %c0_i32_0, %c0_i32_1 : i32, i32, i32
  }
  func.func @transform_10(%arg0: i32) -> (i32, i32, i32) {
    %c0_i32 = arith.constant 0 : i32
    %c0_i32_0 = arith.constant 0 : i32
    %c0_i32_1 = arith.constant 0 : i32
    %c0_i32_2 = arith.constant 0 : i32
    return %c0_i32, %c0_i32_0, %c0_i32_1 : i32, i32, i32
  }
  func.func @transform_11(%arg0: i32) -> (i32, i32, i32) {
    %c0_i32 = arith.constant 0 : i32
    %c0_i32_0 = arith.constant 0 : i32
    %c0_i32_1 = arith.constant 0 : i32
    %c0_i32_2 = arith.constant 0 : i32
    return %c0_i32, %c0_i32_0, %c0_i32_1 : i32, i32, i32
  }
  func.func @transform_12(%arg0: i32) -> (i32, i32) {
    %c0_i32 = arith.constant 0 : i32
    %c0_i32_0 = arith.constant 0 : i32
    %c0_i32_1 = arith.constant 0 : i32
    return %c0_i32, %c0_i32_0 : i32, i32
  }
  func.func @transform_13(%arg0: i32) -> (i32, i32) {
    %c0_i32 = arith.constant 0 : i32
    %c0_i32_0 = arith.constant 0 : i32
    %c0_i32_1 = arith.constant 0 : i32
    return %c0_i32, %c0_i32_0 : i32, i32
  }
  func.func @transform_14(%arg0: i32) -> (i32, i32, i32) {
    %c0_i32 = arith.constant 0 : i32
    %c0_i32_0 = arith.constant 0 : i32
    %c0_i32_1 = arith.constant 0 : i32
    return %arg0, %c0_i32, %c0_i32_0 : i32, i32, i32
  }
  func.func @transform_15(%arg0: i32) -> (i32, i32, i32, i32) {
    %c0_i32 = arith.constant 0 : i32
    %c0_i32_0 = arith.constant 0 : i32
    %c0_i32_1 = arith.constant 0 : i32
    %c0_i32_2 = arith.constant 0 : i32
    return %arg0, %c0_i32, %c0_i32_0, %c0_i32_1 : i32, i32, i32, i32
  }
}

</mosaic_0001>

<bundles_post_ra>
// kernel: tpu_custom_call.1
= control target key start
LH: loop header
LB: loop body
LE: loop exit
PB: predicated region body
PF: predicated region fallthrough
CT: control target
= control target key end

     0   :  { %s3203_s0 = inlined_call_operand.vmem [shape: f32[2,8,64], index: 0, kind: input, shape index: {}]   ;;  %s3204_s1 = inlined_call_operand.vmem [shape: f32[2,8,8], index: 1, kind: input, shape index: {}]   ;;  %s3205_s2 = inlined_call_operand.vmem [shape: bf16[2,64,32], index: 2, kind: input, shape index: {}]   ;;  %s3206_s3 = inlined_call_operand.vmem [shape: bf16[2,64,32], index: 3, kind: input, shape index: {}]   ;;  %s3207_s4 = inlined_call_operand.vmem [shape: bf16[2,64,32], index: 4, kind: input, shape index: {}]   ;;  %s3208_s5 = inlined_call_operand.vmem [shape: bf16[2,32,64], index: 5, kind: input, shape index: {}]   ;;  %s3209_s6 = inlined_call_operand.vmem [shape: f32[2,1,64], index: 6, kind: input, shape index: {}]   ;;  %s3210_s7 = inlined_call_operand.vmem [shape: f32[2,1,64], index: 7, kind: input, shape index: {}]   ;;  %s3211_s8 = inlined_call_operand.vmem [shape: bf16[2,64,128], index: 8, kind: input, shape index: {}]   ;;  %s3212_s9 = inlined_call_operand.vmem [shape: bf16[2,128,64], index: 9, kind: input, shape index: {}]   ;;  %s3213_s10 = inlined_call_operand.vmem [shape: f32[2,1,64], index: 10, kind: input, shape index: {}]   ;;  %s3214_s11 = inlined_call_operand.vmem [shape: f32[2,1,64], index: 11, kind: input, shape index: {}]   ;;  %s3215_s12 = inlined_call_operand.vmem [shape: bf16[64,32], index: 12, kind: input, shape index: {}]   ;;  %s3216_s13 = inlined_call_operand.vmem [shape: f32[1,32], index: 13, kind: input, shape index: {}]   ;;  %s3217_s14 = inlined_call_operand.hbm [shape: f32[2,8,32], index: 14, kind: output, shape index: {0}]   ;;  %s3218_s15 = inlined_call_operand.hbm [shape: f32[2,2,8,32], index: 15, kind: output, shape index: {1}]  }
   0x1   :  { %3234 = sst [smem:[#allocation13_spill]] %s3203_s0 }
   0x2   :  { %3235 = sst [smem:[#allocation14_spill]] %s3204_s1 }
   0x3   :  { %3236 = sst [smem:[#allocation15_spill]] %s3205_s2 }
   0x4   :  { %3237 = sst [smem:[#allocation16_spill]] %s3206_s3 }
   0x5   :  { %3238 = sst [smem:[#allocation17_spill]] %s3207_s4 }
   0x6   :  { %21 = vsyncpa [#allocation3], 0 }
   0x7   :  { %23 = vsyncpa [#allocation3 + $0x1], 0 }
   0x8   :  { %24 = vsyncpa [#allocation5], 0 }
   0x9   :  { %26 = vsyncpa [#allocation5 + $0x1], 0  ;;  %s2701_s18 = smov 0   ;;  %s2703_s19 = smov 0  }
   0xa   :  { %s2705_s20 = smov 0   ;;  %s2707_s21 = smov 0  }
   0xb LB: > { %3239 = sst [smem:[#allocation8_spill]] %s2599_s18  ;;  %s2722_s22 = sadd.s32 4294967295, %s2611_s21   ;;  %s2611_s21 = sphi %s2707_s21, %s3258_s21   ;;  %s2607_s20 = sphi %s2705_s20, %s3260_s20   ;;  %s2603_s19 = sphi %s2703_s19, %s3262_s19   ;;  %s2599_s18 = sphi %s2701_s18, %s3261_s18  }
   0xc   : > { %3240 = sst [smem:[#allocation9_spill]] %s2607_s20  ;;  %s2034_s23 = sadd.s32 4294967294, %s2611_s21  }
   0xd   : > { %s2726_s24 = sadd.s32 1, %s2611_s21   ;;  %s343_s25 = sadd.s32 1, %s2607_s20 }
   0xe   : > { %3241 = sst [smem:[#allocation10_spill]] %s2726_s24  ;;  %s340_s26 = ssub.s32 %s2611_s21, %s2726_s24 }
   0xf   : > { %p353_p0 = scmp.ne.s32.totalorder %s2607_s20, %s2603_s19  ;;  %p341_p1 = scmp.eq.s32.totalorder %s340_s26, 0 }
  0x10   : > { %p354_p2 = scmp.eq.s32.totalorder %s2722_s22, 1  ;;  %p359_p3 = scmp.ne.s32.totalorder %s2603_s19, %s2599_s18 }
  0x11   : > { %p360_p4 = scmp.eq.s32.totalorder %s2034_s23, 1  ;;  %p2037_p7 = scmp.ge.s32.totalorder %s2611_s21, 1 }
  0x12   : > { %s2737_s27 = scalar_select %p341_p1, %s2607_s20, %s343_s25  }
  0x13   : > { %p2739_p5 = por %p354_p2, %p353_p0  ;;  %p2743_p6 = por %p360_p4, %p359_p3 }
  0x14   : > { %3242 = sst [smem:[#allocation11_spill]] %s2737_s27  ;;  %p454_p8 = scmp.lt.s32.totalorder %s2611_s21, 3 }
  0x15   : > { %s3244_s29 = scalar_select %p2743_p6, 1, 0 }
  0x16   : > { %p455_p9 = pnand %p2037_p7, %p454_p8 }
  0x17   : > { %3245 = sst [smem:[#allocation12_spill]] %s3244_s29  ;;  %p510_p10 = scmp.lt.s32.totalorder (!%p455_p9), %s2722_s22, 1 }
  0x18   : > { %458 = sbr.rel (%p455_p9) target bundleno = 3869 (0xf1d), region = 76  ;;  %s3246_s3 = sld [smem:[#allocation16_spill]] (!%p455_p9) }
  0x19   : > { %s3247_s2 = sld [smem:[#allocation15_spill]] (!%p455_p9)  ;;  %s3232_s18 = smov (!%p455_p9), 112  }
  0x1a   : > { %s3248_s0 = sld [smem:[#allocation13_spill]] (!%p455_p9)  ;;  %s2614_s29 = smov (!%p455_p9), 120  }
  0x1b   : > { %s3230_s23 = smov (!%p455_p9), 104   ;;  %s3249_s4 = sld [smem:[#allocation17_spill]] (!%p455_p9) }
  0x1c   : > { %s3250_s1 = sld [smem:[#allocation14_spill]] (!%p455_p9)  ;;  %s3224_s17 = smov (!%p455_p9), 24  }
  0x1d   : > { %s2763_s24 = scalar_select %p510_p10, %s2722_s22, 1  ;;  %vm557_vm0 = vcmask 523264   ;;  %vm706_vm1 = vcmask 64512   ;;  %vm861_vm3 = vcmask 1043456   ;;  %vm848_vm4 = vcmask 130048  }
  0x1e   : > { %v2364_v0 = vld [vmem:[%s3246_s3 + $0x18] sm:$0xff]  ;;  %v2363_v2 = vld [vmem:[%s3246_s3 + $0x10] sm:$0xff]  ;;  %v2362_v4 = vld [vmem:[%s3246_s3 + $0x8] sm:$0xff]  ;;  %vm850_vm5 = vcmask 195584   ;;  %vm852_vm6 = vcmask 261120   ;;  %s3255_s27 = smov 24  }
  0x1f   : > { %v2360_v1 = vld [vmem:[%s3247_s2 + $0x18] sm:$0xff]  ;;  %610 = vmatpush.bf16.msra.mxu1 %v2364_v0  ;;  %v2359_v3 = vld [vmem:[%s3247_s2 + $0x10] sm:$0xff]  ;;  %s2040_s30 = sshll.u32 %s2763_s24, 3  ;;  %v2358_v5 = vld [vmem:[%s3247_s2 + $0x8] sm:$0xff]  ;;  %s3226_s24 = smov 16  }
  0x20   : > { %565 = vmatpush.bf16.msra.mxu0 %v2360_v1  ;;  %s513_s20 = scalar_lea.vmem %s3248_s0, %s2040_s30  ;;  %v2361_v6 = vld [vmem:[%s3246_s3] sm:$0xff]  ;;  %s3082_s25 = sand.u32 1, %s2603_s19  }
  0x21   : > { %v2780_v7 = vld [vmem:[%s513_s20] sm:$0xff]  ;;  %v2368_v17 = vld [vmem:[%s3249_s4 + $0x18] sm:$0xff]  ;;  %v2367_v18 = vld [vmem:[%s3249_s4 + $0x10] sm:$0xff]  ;;  %s3254_s20 = smov 16   ;;  %s2039_s26 = sshll.u32 %s3082_s25, 4 }
  0x22   : > { %v2357_v8 = vld [vmem:[%s3247_s2] sm:$0xff]  ;;  %v524_v9 = vpack.c.bf16 %v2780_v7, %v2780_v7  ;;  %655 = vmatpush.bf16.msra.mxu2 %v2368_v17  ;;  %v2366_v25 = vld [vmem:[%s3249_s4 + $0x8] sm:$0xff]  ;;  %s517_s16 = scalar_lea.vmem %s3250_s1, %s2040_s30  ;;  %s3228_s30 = smov 8  }
  0x23   : > { %611 = vmatpush.bf16.msra.mxu1 %v2363_v2  ;;  %v2365_v29 = vld [vmem:[%s3249_s4] sm:$0xff] }
  0x24   : > { %566 = vmatpush.bf16.msra.mxu0 %v2359_v3  ;;  %v2821_v38 = vld [vmem:[%s517_s16] sm:$0xff]  ;;  %s3098_s16 = scalar_lea.vmem [#allocation4], %s2039_s26 }
  0x25   : > { %vm521_vm2 = vcmp.gt.f32.partialorder %v2821_v38, 0.0 }
  0x26   : > { %656 = vmatpush.bf16.msra.mxu2 %v2367_v18 }
  0x27   : > { %612 = vmatpush.bf16.msra.mxu1 %v2362_v4 }
  0x28   : > { %567 = vmatpush.bf16.msra.mxu0 %v2358_v5 }
  0x2a   : > { %657 = vmatpush.bf16.msra.mxu2 %v2366_v25 }
  0x2b   : > { %613 = vmatpush.bf16.msra.mxu1 %v2361_v6 }
  0x2c   : > { %568 = vmatpush.bf16.msra.mxu0 %v2357_v8 }
  0x2e   : > { %2075 = vmatmul.msk.bf16.vlgmr.msra.gmra.mxu1 %vm557_vm0, %v524_v9  ;;  %658 = vmatpush.bf16.msra.mxu2 %v2365_v29 }
  0x2f   : > { %2058 = vmatmul.msk.bf16.vlgmr.msra.gmra.mxu0 %vm557_vm0, %v524_v9 }
  0x31   : > { %2092 = vmatmul.msk.bf16.vlgmr.msra.gmra.mxu2 %vm557_vm0, %v524_v9 }
  0xab   : > { %v615_v10 = vpop.f32.mrf.mxu1 }
  0xac   : > { %v570_v11 = vpop.f32.mrf.mxu0  ;;  %682 = vrot.lane.b32.xlu1 %v615_v10, %s3232_s18  ;;  %679 = vrot.lane.b32.xlu0 %v615_v10, %s2614_s29  ;;  %v688_v12 = vpack.c.bf16 %v615_v10, %v615_v10 }
  0xad   : > { %668 = vrot.lane.b32.xlu2 %v570_v11, %s3232_s18  ;;  %v674_v14 = vpack.c.bf16 %v570_v11, %v570_v11 }
  0xae   : > { %v711_v13 = vsel %vm706_vm1, %v688_v12, 0 }
  0xaf   : > { %720 = vmatpush.bf16.xpose.msrb.mxu1 %v711_v13 }
  0xb3   : > { %v617_v15 = vpop.f32.mrf.mxu1 }
  0xb4   : > { %v572_v16 = vpop.f32.mrf.mxu0  ;;  %685 = vrot.lane.b32.xlu1 %v615_v10, %s3230_s23  ;;  %665 = vrot.lane.b32.xlu0 %v570_v11, %s2614_s29  ;;  %v660_v50 = vpop.f32.mrf.mxu2 }
  0xb5   : > { %671 = vrot.lane.b32.xlu2 %v570_v11, %s3230_s23  ;;  %v702_v62 = vpack.c.bf16 %v660_v50, %v660_v50 }
  0xb6   : > { %2093 = vmatmul.msk.bf16.vlgmr.msrb.gmra.mxu1 %vm706_vm1, %v674_v14 }
  0xb7   : > { %v863_v63 = vsel %vm861_vm3, %v702_v62, 0 }
  0xb8   : > { %872 = vmatpush.bf16.msrb.mxu2 %v863_v63 }
  0xbc   : > { %v662_v57 = vpop.f32.mrf.mxu2 }
 0x107   : > { %v669_v26 = vpop.permute.xlu2 %668 }
 0x108   : > { %v676_v30 = vpack.c.bf16 %v669_v26, %v669_v26 }
 0x10f   : > { %v672_v34 = vpop.permute.xlu2 %671 }
 0x110   : > { %v677_v35 = vpack.c.bf16 %v672_v34, %v672_v34 }
 0x11e   : > { %v683_v19 = vpop.permute.xlu1 %682  ;;  %v680_v20 = vpop.permute.xlu0 %679 }
 0x11f   : > { %v690_v21 = vpack.c.bf16 %v683_v19, %v683_v19  ;;  %v689_v22 = vpack.c.bf16 %v680_v20, %v680_v20 }
 0x121   : > { %v730_v23 = vsel %vm706_vm1, %v689_v22, 0  ;;  %v749_v24 = vsel %vm706_vm1, %v690_v21, 0 }
 0x122   : > { %739 = vmatpush.bf16.xpose.msra.mxu3 %v730_v23  ;;  %758 = vmatpush.bf16.xpose.msrb.mxu0 %v749_v24 }
 0x126   : > { %v686_v27 = vpop.permute.xlu1 %685  ;;  %v666_v28 = vpop.permute.xlu0 %665 }
 0x127   : > { %v691_v31 = vpack.c.bf16 %v686_v27, %v686_v27  ;;  %v675_v32 = vpack.c.bf16 %v666_v28, %v666_v28 }
 0x129   : > { %v768_v33 = vsel %vm706_vm1, %v691_v31, 0  ;;  %2094 = vmatmul.msk.bf16.vlgmr.msra.gmra.mxu3 %vm706_vm1, %v675_v32  ;;  %2095 = vmatmul.msk.bf16.vlgmr.msrb.gmra.mxu0 %vm706_vm1, %v676_v30 }
 0x12a   : > { %777 = vmatpush.bf16.xpose.msra.mxu1 %v768_v33 }
 0x131   : > { %2096 = vmatmul.msk.bf16.vlgmr.msra.gmra.mxu1 %vm706_vm1, %v677_v35 }
 0x133   : > { %v722_v36 = vpop.f32.mrf.mxu1 }
 0x134   : > { %v783_v53 = vmul.f32 0.35355338, %v722_v36 }
 0x136   : > { %v787_v56 = vsel %vm521_vm2, -1e+09, %v783_v53  ;;  %v2369_v53 = vld [vmem:[%s3208_s5] sm:$0xff] }
 0x137   : > { %v791_v58 = vsel %vm706_vm1, %v787_v56, -inf }
 0x13b   : > { %v724_v37 = vpop.f32.mrf.mxu1 }
 0x1a6   : > { %v760_v39 = vpop.f32.mrf.mxu0 }
 0x1a7   : > { %v785_v40 = vmul.f32 0.35355338, %v760_v39 }
 0x1a9   : > { %v789_v41 = vsel %vm521_vm2, -1e+09, %v785_v40 }
 0x1aa   : > { %v797_v42 = vsel %vm706_vm1, %v789_v41, -inf }
 0x1ab   : > { %798 = vmax.xlane.f32.xlu1 %v797_v42 }
 0x1ac   : > { %v741_v43 = vpop.f32.mrf.mxu3 }
 0x1ad   : > { %v784_v44 = vmul.f32 0.35355338, %v741_v43 }
 0x1ae   : > { %v762_v45 = vpop.f32.mrf.mxu0  ;;  %v779_v46 = vpop.f32.mrf.mxu1 }
 0x1af   : > { %v786_v47 = vmul.f32 0.35355338, %v779_v46  ;;  %v788_v48 = vsel %vm521_vm2, -1e+09, %v784_v44 }
 0x1b0   : > { %v794_v49 = vsel %vm706_vm1, %v788_v48, -inf }
 0x1b1   : > { %795 = vmax.xlane.f32.xlu0 %v794_v49  ;;  %v790_v51 = vsel %vm521_vm2, -1e+09, %v786_v47 }
 0x1b2   : > { %v800_v52 = vsel %vm706_vm1, %v790_v51, -inf }
 0x1b3   : > { %801 = vmax.xlane.f32.xlu2 %v800_v52  ;;  %v2370_v52 = vld [vmem:[%s3208_s5 + $0x8] sm:$0xff] }
 0x1b4   : > { %v743_v54 = vpop.f32.mrf.mxu3  ;;  %976 = vmatpush.bf16.msra.mxu2 %v2370_v52 }
 0x1b6   : > { %v781_v55 = vpop.f32.mrf.mxu1 }
 0x1b8   : > { %977 = vmatpush.bf16.msra.mxu2 %v2369_v53 }
 0x1bb   : > { %792 = vmax.xlane.f32.xlu2 %v791_v58 }
 0x1c4   : > { %693 = vrot.lane.b32.xlu1 %v660_v50, %s2614_s29 }
 0x21e   : > { %v799_v59 = vpop.xlane.xlu1 %798 }
 0x21f   : > { %v805_v60 = vsub.f32 %v789_v41, %v799_v59 }
 0x221   : > { %v811_v61 = vmul.f32 1.442695, %v805_v60 }
 0x223   : > { %2475 = vpow2.f32 %v811_v61 }
 0x224   : > { %v796_v0 = vpop.xlane.xlu0 %795 }
 0x225   : > { %v804_v4 = vsub.f32 %v788_v48, %v796_v0 }
 0x226   : > { %v802_v1 = vpop.xlane.xlu2 %801 }
 0x227   : > { %v806_v2 = vsub.f32 %v790_v51, %v802_v1  ;;  %v809_v8 = vmul.f32 1.442695, %v804_v4  ;;  %v2619_v1 = vmov 64.0  }
 0x229   : > { %v2476_v3 = vpop.eup %2475  ;;  %v813_v5 = vmul.f32 1.442695, %v806_v2 }
 0x22a   : > { %v821_v6 = vsel %vm706_vm1, %v2476_v3, 0.0 }
 0x22b   : > { %2477 = vpow2.f32 %v813_v5  ;;  %822 = vadd.xlane.f32.xlu2 %v821_v6 }
 0x22c   : > { %2479 = vpow2.f32 %v809_v8 }
 0x22e   : > { %v793_v9 = vpop.xlane.xlu2 %792 }
 0x22f   : > { %v803_v10 = vsub.f32 %v787_v56, %v793_v9 }
 0x231   : > { %v2478_v11 = vpop.eup %2477  ;;  %v807_v12 = vmul.f32 1.442695, %v803_v10 }
 0x232   : > { %v824_v13 = vsel %vm706_vm1, %v2478_v11, 0.0  ;;  %v2480_v14 = vpop.eup %2479 }
 0x233   : > { %2481 = vpow2.f32 %v807_v12  ;;  %825 = vadd.xlane.f32.xlu0 %v824_v13  ;;  %v818_v16 = vsel %vm706_vm1, %v2480_v14, 0.0  ;;  %v2374_v13 = vld [vmem:[%s3211_s8 + $0x18] sm:$0xff] }
 0x236   : > { %v694_v18 = vpop.permute.xlu1 %693 }
 0x237   : > { %v703_v19 = vpack.c.bf16 %v694_v18, %v694_v18 }
 0x239   : > { %v2482_v15 = vpop.eup %2481  ;;  %v882_v20 = vsel %vm861_vm3, %v703_v19, 0 }
 0x23a   : > { %v815_v17 = vsel %vm706_vm1, %v2482_v15, 0.0  ;;  %891 = vmatpush.bf16.msrb.mxu3 %v882_v20  ;;  %v2381_v20 = vld [vmem:[%s3212_s9 + $0x30] sm:$0xff] }
 0x23b   : > { %819 = vadd.xlane.f32.xlu0 %v818_v16  ;;  %816 = vadd.xlane.f32.xlu1 %v815_v17  ;;  %v2371_v16 = vld [vmem:[%s3211_s8] sm:$0xff]  ;;  %v2382_v17 = vld [vmem:[%s3212_s9 + $0x38] sm:$0xff] }
 0x23e   : > { %1062 = vmatpush.bf16.msra.mxu3 %v2374_v13 }
 0x243   : > { %696 = vrot.lane.b32.xlu2 %v660_v50, %s3232_s18  ;;  %s3251_s18 = smov 112  }
 0x24f   : > { %699 = vrot.lane.b32.xlu0 %v660_v50, %s3230_s23  ;;  %s3252_s23 = smov 104  }
 0x29e   : > { %v823_v21 = vpop.xlane.xlu2 %822 }
 0x29f   : > { %2483 = vrcp.f32 %v823_v21 }
 0x2a5   : > { %v2484_v22 = vpop.eup %2483 }
 0x2a6   : > { %v826_v23 = vpop.xlane.xlu0 %825  ;;  %v697_v24 = vpop.permute.xlu2 %696  ;;  %v2845_v25 = vmul.f32 %v2484_v22, %v2476_v3  ;;  %v2380_v22 = vld [vmem:[%s3212_s9 + $0x28] sm:$0xff] }
 0x2a7   : > { %v704_v26 = vpack.c.bf16 %v697_v24, %v697_v24 }
 0x2a8   : > { %v856_v28 = vpack.c.bf16 %v2845_v25, %v2845_v25 }
 0x2a9   : > { %v901_v27 = vsel %vm861_vm3, %v704_v26, 0 }
 0x2aa   : > { %910 = vmatpush.bf16.msra.mxu0 %v901_v27  ;;  %v2378_v27 = vld [vmem:[%s3212_s9 + $0x18] sm:$0xff] }
 0x2ad   : > { %2099 = vmatmul.msk.bf16.vlgmr.msra.gmra.mxu0 %vm706_vm1, %v856_v28 }
 0x2ae   : > { %v820_v29 = vpop.xlane.xlu0 %819  ;;  %v817_v30 = vpop.xlane.xlu1 %816  ;;  %1137 = vmatpush.bf16.msrb.mxu0 %v2382_v17  ;;  %v2468_v17 = vld [vmem:[%s3213_s10] ss:$0 sm:$0xff] }
 0x2af   : > { %2485 = vrcp.f32 %v820_v29 }
 0x2b0   : > { %2487 = vrcp.f32 %v817_v30  ;;  %v2377_v30 = vld [vmem:[%s3212_s9 + $0x10] sm:$0xff] }
 0x2b1   : > { %2489 = vrcp.f32 %v826_v23  ;;  %v2379_v23 = vld [vmem:[%s3212_s9 + $0x20] sm:$0xff] }
 0x2b2   : > { %2491 = vrcp.f32 %v2619_v1  ;;  %1138 = vmatpush.bf16.msrb.mxu0 %v2381_v20  ;;  %v2384_v1 = vld [vmem:[%s3247_s2 + $0x28] sm:$0xff] }
 0x2b5   : > { %v2486_v31 = vpop.eup %2485 }
 0x2b6   : > { %v2488_v32 = vpop.eup %2487  ;;  %v2851_v33 = vmul.f32 %v2486_v31, %v2480_v14  ;;  %v2373_v14 = vld [vmem:[%s3211_s8 + $0x10] sm:$0xff]  ;;  %1139 = vmatpush.bf16.msrb.mxu0 %v2380_v22 }
 0x2b7   : > { %v2853_v34 = vmul.f32 %v2488_v32, %v2482_v15  ;;  %v2490_v37 = vpop.eup %2489  ;;  %1063 = vmatpush.bf16.msra.mxu3 %v2373_v14  ;;  %v2372_v15 = vld [vmem:[%s3211_s8 + $0x8] sm:$0xff] }
 0x2b8   : > { %v855_v35 = vpack.c.bf16 %v2851_v33, %v2851_v33  ;;  %v2861_v40 = vmul.f32 %v2490_v37, %v2478_v11  ;;  %v2492_v2 = vpop.eup %2491 }
 0x2b9   : > { %v854_v36 = vpack.c.bf16 %v2853_v34, %v2853_v34  ;;  %v989_v3 = vmul.f32 64.0, %v2492_v2  ;;  %vm993_vm7 = vweird.f32 %v2492_v2 }
 0x2ba   : > { %2098 = vmatmul.msk.bf16.vlgmr.msrb.gmra.mxu3 %vm706_vm1, %v855_v35  ;;  %v857_v43 = vpack.c.bf16 %v2861_v40, %v2861_v40  ;;  %1140 = vmatpush.bf16.msrb.mxu0 %v2379_v23  ;;  %v2466_v35 = vld [vmem:[%s3209_s6] ss:$0 sm:$0xff] }
 0x2bb   : > { %2097 = vmatmul.msk.bf16.vlgmr.msrb.gmra.mxu2 %vm706_vm1, %v854_v36  ;;  %v990_v4 = vsub.f32 1.0, %v989_v3  ;;  %1064 = vmatpush.bf16.msra.mxu3 %v2372_v15  ;;  %v2376_v36 = vld [vmem:[%s3212_s9 + $0x8] sm:$0xff] }
 0x2bc   : > { %v2392_v3 = vld [vmem:[%s3249_s4 + $0x28] sm:$0xff] }
 0x2bd   : > { %v991_v5 = vmul.f32 %v2492_v2, %v990_v4  ;;  %v2383_v4 = vld [vmem:[%s3247_s2 + $0x20] sm:$0xff] }
 0x2be   : > { %1141 = vmatpush.bf16.msrb.mxu0 %v2378_v27 }
 0x2bf   : > { %v992_v6 = vadd.f32 %v2492_v2, %v991_v5  ;;  %1065 = vmatpush.bf16.msra.mxu3 %v2371_v16  ;;  %v2387_v5 = vld [vmem:[%s3246_s3 + $0x20] sm:$0xff] }
 0x2c1   : > { %v700_v39 = vpop.permute.xlu0 %699  ;;  %v2882_v8 = vsel %vm993_vm7, %v2492_v2, %v992_v6  ;;  %v2388_v2 = vld [vmem:[%s3246_s3 + $0x28] sm:$0xff]  ;;  %v2391_v6 = vld [vmem:[%s3249_s4 + $0x20] sm:$0xff] }
 0x2c2   : > { %v705_v41 = vpack.c.bf16 %v700_v39, %v700_v39  ;;  %1142 = vmatpush.bf16.msrb.mxu0 %v2377_v30  ;;  %v2467_v39 = vld [vmem:[%s3210_s7] ss:$0 sm:$0xff] }
 0x2c4   : > { %v920_v42 = vsel %vm861_vm3, %v705_v41, 0 }
 0x2c5   : > { %929 = vmatpush.bf16.msrb.mxu1 %v920_v42 }
 0x2c6   : > { %1143 = vmatpush.bf16.msrb.mxu0 %v2376_v36 }
 0x2c8   : > { %2100 = vmatmul.msk.bf16.vlgmr.msrb.gmra.mxu1 %vm706_vm1, %v857_v43 }
 0x32a   : > { %v912_v44 = vpop.f32.mrf.mxu0 }
 0x32b   : > { %940 = vrot.lane.b32.xlu2 %v912_v44, %s3226_s24 }
 0x332   : > { %v914_v45 = vpop.f32.mrf.mxu0 }
 0x333   : > { %v2375_v45 = vld [vmem:[%s3212_s9] sm:$0xff] }
 0x334   : > { %1144 = vmatpush.bf16.msrb.mxu0 %v2375_v45 }
 0x33d   : > { %v893_v46 = vpop.f32.mrf.mxu3 }
 0x33e   : > { %v874_v47 = vpop.f32.mrf.mxu2  ;;  %936 = vrot.lane.b32.xlu0 %v893_v46, %s3228_s30  ;;  %s2413_s30 = sshll.u32 %s2722_s22, 4 }
 0x345   : > { %v895_v48 = vpop.f32.mrf.mxu3  ;;  %v931_v49 = vpop.f32.mrf.mxu1 }
 0x346   : > { %v876_v50 = vpop.f32.mrf.mxu2  ;;  %944 = vrot.lane.b32.xlu0 %v931_v49, %s3224_s17  ;;  %s1923_s17 = scalar_lea.hbm %s3218_s15, %s2413_s30 }
 0x34d   : > { %v933_v51 = vpop.f32.mrf.mxu1 }
 0x385   : > { %v941_v56 = vpop.permute.xlu2 %940 }
 0x3b0   : > { %v937_v54 = vpop.permute.xlu0 %936 }
 0x3b1   : > { %v947_v55 = vsel %vm706_vm1, %v874_v47, %v937_v54 }
 0x3b2   : > { %v948_v58 = vsel %vm848_vm4, %v947_v55, %v941_v56 }
 0x3b8   : > { %v945_v57 = vpop.permute.xlu0 %944 }
 0x3b9   : > { %v949_v59 = vsel %vm850_vm5, %v948_v58, %v945_v57 }
 0x3ba   : > { %v950_v60 = vpack.c.bf16 %v949_v59, %v949_v59  ;;  %v2386_v59 = vld [vmem:[%s3247_s2 + $0x38] sm:$0xff] }
 0x3bb   : > { %1223 = vmatpush.bf16.msra.mxu1 %v2386_v59 }
 0x3bc   : > { %2109 = vmatmul.msk.bf16.vlgmr.msra.gmra.mxu2 %vm852_vm6, %v950_v60  ;;  %v2390_v60 = vld [vmem:[%s3246_s3 + $0x38] sm:$0xff] }
 0x3bd   : > { %1269 = vmatpush.bf16.msrb.mxu2 %v2390_v60 }
 0x43f   : > { %v979_v61 = vpop.f32.mrf.mxu2 }
 0x440   : > { %v980_v62 = vadd.f32 %v979_v61, %v2780_v7  ;;  %v2394_v61 = vld [vmem:[%s3249_s4 + $0x38] sm:$0xff] }
 0x441   : > { %1315 = vmatpush.bf16.msrb.mxu3 %v2394_v61 }
 0x442   : > { %v985_v63 = vsel %vm557_vm0, %v980_v62, 0.0 }
 0x443   : > { %986 = vadd.xlane.f32.xlu2 %v985_v63  ;;  %v2389_v63 = vld [vmem:[%s3246_s3 + $0x30] sm:$0xff]  ;;  %s2537_s3 = scalar_lea.hbm %s3218_s15, 32 }
 0x444   : > { %1270 = vmatpush.bf16.msrb.mxu2 %v2389_v63 }
 0x447   : > { %v981_v0 = vpop.f32.mrf.mxu2 }
 0x448   : > { %v2393_v0 = vld [vmem:[%s3249_s4 + $0x30] sm:$0xff]  ;;  %1271 = vmatpush.bf16.msrb.mxu2 %v2388_v2 }
 0x449   : > { %1316 = vmatpush.bf16.msrb.mxu3 %v2393_v0 }
 0x44c   : > { %1272 = vmatpush.bf16.msrb.mxu2 %v2387_v5 }
 0x44d   : > { %1317 = vmatpush.bf16.msrb.mxu3 %v2392_v3 }
 0x451   : > { %1318 = vmatpush.bf16.msrb.mxu3 %v2391_v6 }
 0x4b6   : > { %v987_v9 = vpop.xlane.xlu2 %986 }
 0x4b7   : > { %v995_v10 = vmul.f32 %v2882_v8, %v987_v9 }
 0x4b9   : > { %v996_v11 = vsub.f32 %v980_v62, %v995_v10  ;;  %v2385_v62 = vld [vmem:[%s3247_s2 + $0x30] sm:$0xff] }
 0x4ba   : > { %1224 = vmatpush.bf16.msra.mxu1 %v2385_v62 }
 0x4bb   : > { %v997_v12 = vmul.f32 %v996_v11, %v996_v11 }
 0x4bd   : > { %v998_v7 = vsel %vm557_vm0, %v997_v12, 0.0 }
 0x4be   : > { %999 = vadd.xlane.f32.xlu0 %v998_v7  ;;  %1225 = vmatpush.bf16.msra.mxu1 %v2384_v1 }
 0x4c2   : > { %1226 = vmatpush.bf16.msra.mxu1 %v2383_v4 }
 0x531   : > { %v1000_v18 = vpop.xlane.xlu0 %999 }
 0x532   : > { %v1001_v19 = vmul.f32 %v1000_v18, %v2882_v8 }
 0x534   : > { %v1002_v21 = vadd.f32 1e-05, %v1001_v19  ;;  %v2469_v19 = vld [vmem:[%s3214_s11] ss:$0 sm:$0xff] }
 0x536   : > { %2493 = vrsqrt.f32 %v1002_v21  ;;  %vm1009_vm9 = vweird.f32 %v1002_v21 }
 0x53c   : > { %v2494_v24 = vpop.eup %2493 }
 0x53d   : > { %v1004_v26 = vmul.f32 %v2494_v24, %v1002_v21  ;;  %vm1010_vm8 = vweird.f32 %v2494_v24 }
 0x53e   : > { %vm1011_vm10 = vmor %vm1009_vm9, %vm1010_vm8 }
 0x53f   : > { %v1005_v28 = vmul.f32 %v2494_v24, %v1004_v26 }
 0x541   : > { %v1006_v29 = vmul.f32 0.5, %v1005_v28 }
 0x543   : > { %v1007_v31 = vsub.f32 1.5, %v1006_v29 }
 0x545   : > { %v1008_v32 = vmul.f32 %v2494_v24, %v1007_v31 }
 0x547   : > { %v1012_v37 = vsel %vm1011_vm10, %v2494_v24, %v1008_v32 }
 0x548   : > { %v1013_v41 = vmul.f32 %v1012_v37, %v996_v11 }
 0x54a   : > { %v1017_v42 = vmul.f32 %v2466_v35, %v1013_v41 }
 0x54c   : > { %v1021_v43 = vadd.f32 %v2467_v39, %v1017_v42 }
 0x54e   : > { %v1022_v44 = vpack.c.bf16 %v1021_v43, %v1021_v43 }
 0x550   : > { %2126 = vmatmul.msk.bf16.vlgmr.msra.gmra.mxu3 %vm557_vm0, %v1022_v44 }
 0x5d3   : > { %v1067_v46 = vpop.f32.mrf.mxu3 }
 0x5d4   : > { %v1071_v47 = vmax.f32 %v1067_v46, 0.0 }
 0x5d6   : > { %v1072_v48 = vpack.c.bf16 %v1071_v47, %v1071_v47 }
 0x5d8   : > { %1145 = vmatmul.bf16.vlgmr.msrb.gmra.mxu0 %v1072_v48 }
 0x5db   : > { %v1069_v49 = vpop.f32.mrf.mxu3 }
 0x655   : > { %v1146_v50 = vpop.f32.mrf.mxu0 }
 0x656   : > { %v1147_v51 = vadd.f32 %v1146_v50, %v1021_v43 }
 0x658   : > { %v1152_v52 = vsel %vm557_vm0, %v1147_v51, 0.0 }
 0x659   : > { %1153 = vadd.xlane.f32.xlu1 %v1152_v52 }
 0x65d   : > { %v1148_v53 = vpop.f32.mrf.mxu0 }
 0x6cc   : > { %v1154_v54 = vpop.xlane.xlu1 %1153 }
 0x6cd   : > { %v1155_v55 = vmul.f32 %v1154_v54, %v2882_v8 }
 0x6cf   : > { %v1156_v56 = vsub.f32 %v1147_v51, %v1155_v55 }
 0x6d1   : > { %v1157_v57 = vmul.f32 %v1156_v56, %v1156_v56 }
 0x6d3   : > { %v1158_v58 = vsel %vm557_vm0, %v1157_v57, 0.0 }
 0x6d4   : > { %1159 = vadd.xlane.f32.xlu1 %v1158_v58 }
 0x747   : > { %v1160_v9 = vpop.xlane.xlu1 %1159 }
 0x748   : > { %v1161_v10 = vmul.f32 %v1160_v9, %v2882_v8 }
 0x74a   : > { %v1162_v11 = vadd.f32 1e-05, %v1161_v10 }
 0x74c   : > { %2495 = vrsqrt.f32 %v1162_v11  ;;  %vm1169_vm12 = vweird.f32 %v1162_v11 }
 0x752   : > { %v2496_v12 = vpop.eup %2495 }
 0x753   : > { %v1164_v7 = vmul.f32 %v2496_v12, %v1162_v11  ;;  %vm1170_vm11 = vweird.f32 %v2496_v12 }
 0x754   : > { %vm1171_vm13 = vmor %vm1169_vm12, %vm1170_vm11 }
 0x755   : > { %v1165_v13 = vmul.f32 %v2496_v12, %v1164_v7 }
 0x757   : > { %v1166_v14 = vmul.f32 0.5, %v1165_v13 }
 0x759   : > { %v1167_v15 = vsub.f32 1.5, %v1166_v14 }
 0x75b   : > { %v1168_v16 = vmul.f32 %v2496_v12, %v1167_v15 }
 0x75d   : > { %v1172_v18 = vsel %vm1171_vm13, %v2496_v12, %v1168_v16 }
 0x75e   : > { %v1173_v20 = vmul.f32 %v1172_v18, %v1156_v56 }
 0x760   : > { %v1177_v21 = vmul.f32 %v2468_v17, %v1173_v20 }
 0x762   : > { %v2976_v22 = vadd.f32 %v2469_v19, %v1177_v21 }
 0x764   : > { %v1182_v23 = vpack.c.bf16 %v2976_v22, %v2976_v22 }
 0x766   : > { %2183 = vmatmul.msk.bf16.vlgmr.msra.gmra.mxu1 %vm557_vm0, %v1182_v23  ;;  %2208 = vmatmul.msk.bf16.vlgmr.msrb.gmra.mxu2 %vm557_vm0, %v1182_v23 }
 0x767   : > { %2233 = vmatmul.msk.bf16.vlgmr.msrb.gmra.mxu3 %vm557_vm0, %v1182_v23 }
 0x7e3   : > { %v1228_v24 = vpop.f32.mrf.mxu1 }
 0x7e4   : > { %1325 = vrot.lane.b32.xlu0 %v1228_v24, %s2614_s29  ;;  %v1334_v36 = vpack.c.bf16 %v1228_v24, %v1228_v24 }
 0x7e9   : > { %v1274_v26 = vpop.f32.mrf.mxu2 }
 0x7ea   : > { %v2984_v27 = vpop.f32.mrf.mxu3  ;;  %1342 = vrot.lane.b32.xlu2 %v1274_v26, %s3251_s18  ;;  %1339 = vrot.lane.b32.xlu1 %v1274_v26, %s2614_s29  ;;  %v1348_v28 = vpack.c.bf16 %v1274_v26, %v1274_v26 }
 0x7eb   : > { %v1230_v29 = vpop.f32.mrf.mxu1  ;;  %v1362_v30 = vpack.c.bf16 %v2984_v27, %v2984_v27 }
 0x7ec   : > { %1331 = vrot.lane.b32.xlu0 %v1228_v24, %s3252_s23  ;;  %v1370_v31 = vsel %vm706_vm1, %v1348_v28, 0 }
 0x7ed   : > { %1379 = vmatpush.bf16.xpose.msrb.mxu1 %v1370_v31  ;;  %v1519_v32 = vsel %vm861_vm3, %v1362_v30, 0 }
 0x7f1   : > { %v1276_v35 = vpop.f32.mrf.mxu2 }
 0x7f2   : > { %v1322_v37 = vpop.f32.mrf.mxu3  ;;  %1345 = vrot.lane.b32.xlu2 %v1274_v26, %s3252_s23  ;;  %1328 = vrot.lane.b32.xlu1 %v1228_v24, %s3251_s18 }
 0x7f4   : > { %2234 = vmatmul.msk.bf16.vlgmr.msrb.gmra.mxu1 %vm706_vm1, %v1334_v36 }
 0x7f5   : > { %1528 = vmatpush.bf16.msra.mxu1 %v1519_v32 }
 0x844   : > { %v1343_v39 = vpop.permute.xlu2 %1342 }
 0x845   : > { %v1350_v41 = vpack.c.bf16 %v1343_v39, %v1343_v39 }
 0x847   : > { %v1408_v42 = vsel %vm706_vm1, %v1350_v41, 0 }
 0x848   : > { %1417 = vmatpush.bf16.xpose.msra.mxu3 %v1408_v42 }
 0x84c   : > { %v1346_v43 = vpop.permute.xlu2 %1345 }
 0x84d   : > { %v1351_v44 = vpack.c.bf16 %v1346_v43, %v1346_v43 }
 0x84f   : > { %v1427_v45 = vsel %vm706_vm1, %v1351_v44, 0 }
 0x850   : > { %1436 = vmatpush.bf16.xpose.msra.mxu0 %v1427_v45 }
 0x856   : > { %v1326_v46 = vpop.permute.xlu0 %1325 }
 0x857   : > { %v1335_v53 = vpack.c.bf16 %v1326_v46, %v1326_v46 }
 0x85c   : > { %v1340_v47 = vpop.permute.xlu1 %1339 }
 0x85d   : > { %v1349_v48 = vpack.c.bf16 %v1340_v47, %v1340_v47 }
 0x85e   : > { %v1332_v49 = vpop.permute.xlu0 %1331 }
 0x85f   : > { %v1389_v50 = vsel %vm706_vm1, %v1349_v48, 0  ;;  %v1337_v51 = vpack.c.bf16 %v1332_v49, %v1332_v49 }
 0x860   : > { %1398 = vmatpush.bf16.xpose.msra.mxu2 %v1389_v50 }
 0x861   : > { %2237 = vmatmul.msk.bf16.vlgmr.msra.gmra.mxu0 %vm706_vm1, %v1337_v51 }
 0x864   : > { %v1329_v52 = vpop.permute.xlu1 %1328 }
 0x865   : > { %v1336_v54 = vpack.c.bf16 %v1329_v52, %v1329_v52 }
 0x867   : > { %2235 = vmatmul.msk.bf16.vlgmr.msra.gmra.mxu2 %vm706_vm1, %v1335_v53  ;;  %2236 = vmatmul.msk.bf16.vlgmr.msra.gmra.mxu3 %vm706_vm1, %v1336_v54 }
 0x871   : > { %v1381_v55 = vpop.f32.mrf.mxu1 }
 0x872   : > { %v1442_v6 = vmul.f32 0.35355338, %v1381_v55 }
 0x874   : > { %v1446_v11 = vsel %vm521_vm2, -1e+09, %v1442_v6  ;;  %v2396_v6 = vld [vmem:[%s3208_s5 + $0x18] sm:$0xff] }
 0x875   : > { %v1450_v12 = vsel %vm706_vm1, %v1446_v11, -inf  ;;  %1633 = vmatpush.bf16.msrb.mxu1 %v2396_v6 }
 0x879   : > { %v1383_v56 = vpop.f32.mrf.mxu1 }
 0x8de   : > { %v1438_v57 = vpop.f32.mrf.mxu0 }
 0x8df   : > { %v1445_v58 = vmul.f32 0.35355338, %v1438_v57 }
 0x8e1   : > { %v1449_v59 = vsel %vm521_vm2, -1e+09, %v1445_v58 }
 0x8e2   : > { %v1459_v60 = vsel %vm706_vm1, %v1449_v59, -inf }
 0x8e3   : > { %1460 = vmax.xlane.f32.xlu0 %v1459_v60 }
 0x8e6   : > { %v1440_v61 = vpop.f32.mrf.mxu0 }
 0x8ea   : > { %v1400_v62 = vpop.f32.mrf.mxu2  ;;  %v1419_v63 = vpop.f32.mrf.mxu3 }
 0x8eb   : > { %v1443_v0 = vmul.f32 0.35355338, %v1400_v62  ;;  %v1444_v1 = vmul.f32 0.35355338, %v1419_v63 }
 0x8ed   : > { %v1448_v2 = vsel %vm521_vm2, -1e+09, %v1444_v1  ;;  %v1447_v3 = vsel %vm521_vm2, -1e+09, %v1443_v0 }
 0x8ee   : > { %v1456_v4 = vsel %vm706_vm1, %v1448_v2, -inf  ;;  %v1453_v5 = vsel %vm706_vm1, %v1447_v3, -inf }
 0x8ef   : > { %1457 = vmax.xlane.f32.xlu2 %v1456_v4  ;;  %1454 = vmax.xlane.f32.xlu1 %v1453_v5 }
 0x8f2   : > { %v1402_v9 = vpop.f32.mrf.mxu2  ;;  %v1421_v10 = vpop.f32.mrf.mxu3 }
 0x8f3   : > { %v2395_v9 = vld [vmem:[%s3208_s5 + $0x10] sm:$0xff] }
 0x8f4   : > { %1634 = vmatpush.bf16.msrb.mxu1 %v2395_v9 }
 0x8f7   : > { %1451 = vmax.xlane.f32.xlu1 %v1450_v12 }
 0x910   : > { %1353 = vrot.lane.b32.xlu1 %v2984_v27, %s2614_s29  ;;  %s3253_s29 = smov 8  }
 0x956   : > { %v1461_v7 = vpop.xlane.xlu0 %1460 }
 0x957   : > { %v1465_v13 = vsub.f32 %v1449_v59, %v1461_v7 }
 0x959   : > { %v1472_v14 = vmul.f32 1.442695, %v1465_v13 }
 0x95b   : > { %2497 = vpow2.f32 %v1472_v14 }
 0x961   : > { %v2498_v15 = vpop.eup %2497 }
 0x962   : > { %v1458_v16 = vpop.xlane.xlu2 %1457  ;;  %v1455_v17 = vpop.xlane.xlu1 %1454  ;;  %v1483_v18 = vsel %vm706_vm1, %v2498_v15, 0.0 }
 0x963   : > { %v1464_v19 = vsub.f32 %v1448_v2, %v1458_v16  ;;  %v1463_v20 = vsub.f32 %v1447_v3, %v1455_v17  ;;  %1484 = vadd.xlane.f32.xlu0 %v1483_v18 }
 0x965   : > { %v1470_v38 = vmul.f32 1.442695, %v1464_v19  ;;  %v1468_v21 = vmul.f32 1.442695, %v1463_v20 }
 0x967   : > { %2499 = vpow2.f32 %v1470_v38 }
 0x968   : > { %2501 = vpow2.f32 %v1468_v21 }
 0x96a   : > { %v1452_v23 = vpop.xlane.xlu1 %1451 }
 0x96b   : > { %v1462_v24 = vsub.f32 %v1446_v11, %v1452_v23 }
 0x96d   : > { %v2500_v26 = vpop.eup %2499  ;;  %v1466_v28 = vmul.f32 1.442695, %v1462_v24 }
 0x96e   : > { %v2502_v29 = vpop.eup %2501  ;;  %v1480_v30 = vsel %vm706_vm1, %v2500_v26, 0.0 }
 0x96f   : > { %2503 = vpow2.f32 %v1466_v28  ;;  %v1477_v31 = vsel %vm706_vm1, %v2502_v29, 0.0  ;;  %1481 = vadd.xlane.f32.xlu0 %v1480_v30  ;;  %v2398_v28 = vld [vmem:[%s3211_s8 + $0x28] sm:$0xff] }
 0x970   : > { %1478 = vadd.xlane.f32.xlu2 %v1477_v31 }
 0x975   : > { %v2504_v32 = vpop.eup %2503 }
 0x976   : > { %v1474_v35 = vsel %vm706_vm1, %v2504_v32, 0.0 }
 0x977   : > { %1475 = vadd.xlane.f32.xlu1 %v1474_v35 }
 0x982   : > { %v1354_v36 = vpop.permute.xlu1 %1353 }
 0x983   : > { %v1363_v37 = vpack.c.bf16 %v1354_v36, %v1354_v36  ;;  %1359 = vrot.lane.b32.xlu0 %v2984_v27, %s3252_s23 }
 0x985   : > { %v1538_v39 = vsel %vm861_vm3, %v1363_v37, 0  ;;  %v2406_v37 = vld [vmem:[%s3212_s9 + $0x68] sm:$0xff] }
 0x986   : > { %1547 = vmatpush.bf16.msrb.mxu2 %v1538_v39 }
 0x988   : > { %1356 = vrot.lane.b32.xlu2 %v2984_v27, %s3251_s18  ;;  %s1924_s18 = sshll.u32 %s3098_s16, 4  ;;  %s1925_s18 = int_to_ptr.vmem [resolvable:$true] %s1924_s18 }
 0x9d6   : > { %v1485_v41 = vpop.xlane.xlu0 %1484 }
 0x9e2   : > { %v1482_v42 = vpop.xlane.xlu0 %1481 }
 0x9e3   : > { %v1479_v43 = vpop.xlane.xlu2 %1478  ;;  %2505 = vrcp.f32 %v1482_v42 }
 0x9e4   : > { %2507 = vrcp.f32 %v1479_v43 }
 0x9e9   : > { %v2506_v44 = vpop.eup %2505 }
 0x9ea   : > { %v2508_v45 = vpop.eup %2507  ;;  %v1476_v46 = vpop.xlane.xlu1 %1475  ;;  %v1492_v49 = vmul.f32 %v2506_v44, %v2500_v26  ;;  %v2399_v26 = vld [vmem:[%s3211_s8 + $0x30] sm:$0xff] }
 0x9eb   : > { %v1491_v47 = vmul.f32 %v2508_v45, %v2502_v29  ;;  %v1357_v48 = vpop.permute.xlu2 %1356  ;;  %2509 = vrcp.f32 %v1476_v46  ;;  %v2408_v29 = vld [vmem:[%s3212_s9 + $0x78] sm:$0xff] }
 0x9ec   : > { %v1364_v50 = vpack.c.bf16 %v1357_v48, %v1357_v48  ;;  %2511 = vrcp.f32 %v1485_v41  ;;  %v1513_v27 = vpack.c.bf16 %v1492_v49, %v1492_v49  ;;  %v2405_v41 = vld [vmem:[%s3212_s9 + $0x60] sm:$0xff]  ;;  %v2404_v45 = vld [vmem:[%s3212_s9 + $0x58] sm:$0xff] }
 0x9ed   : > { %v1512_v51 = vpack.c.bf16 %v1491_v47, %v1491_v47 }
 0x9ee   : > { %v1557_v52 = vsel %vm861_vm3, %v1364_v50, 0 }
 0x9ef   : > { %2240 = vmatmul.msk.bf16.vlgmr.msrb.gmra.mxu2 %vm706_vm1, %v1512_v51  ;;  %1566 = vmatpush.bf16.msrb.mxu3 %v1557_v52  ;;  %v2403_v52 = vld [vmem:[%s3212_s9 + $0x50] sm:$0xff] }
 0x9f1   : > { %v2510_v53 = vpop.eup %2509 }
 0x9f2   : > { %v3027_v54 = vmul.f32 %v2510_v53, %v2504_v32  ;;  %2241 = vmatmul.msk.bf16.vlgmr.msrb.gmra.mxu3 %vm706_vm1, %v1513_v27  ;;  %v2512_v55 = vpop.eup %2511  ;;  %v2407_v32 = vld [vmem:[%s3212_s9 + $0x70] sm:$0xff] }
 0x9f3   : > { %v1493_v58 = vmul.f32 %v2512_v55, %v2498_v15  ;;  %1791 = vmatpush.bf16.msra.mxu3 %v2408_v29  ;;  %v2402_v55 = vld [vmem:[%s3212_s9 + $0x48] sm:$0xff] }
 0x9f4   : > { %v1511_v56 = vpack.c.bf16 %v3027_v54, %v3027_v54 }
 0x9f5   : > { %v1360_v57 = vpop.permute.xlu0 %1359  ;;  %v1514_v61 = vpack.c.bf16 %v1493_v58, %v1493_v58 }
 0x9f6   : > { %v1365_v59 = vpack.c.bf16 %v1360_v57, %v1360_v57  ;;  %2239 = vmatmul.msk.bf16.vlgmr.msra.gmra.mxu1 %vm706_vm1, %v1511_v56  ;;  %v2471_v57 = vld [vmem:[%s3210_s7 + $0x1] ss:$0 sm:$0xff] }
 0x9f7   : > { %1792 = vmatpush.bf16.msra.mxu3 %v2407_v32 }
 0x9f8   : > { %v1576_v60 = vsel %vm861_vm3, %v1365_v59, 0 }
 0x9f9   : > { %1585 = vmatpush.bf16.msrb.mxu0 %v1576_v60 }
 0x9fb   : > { %1793 = vmatpush.bf16.msra.mxu3 %v2406_v37 }
 0x9fc   : > { %2242 = vmatmul.msk.bf16.vlgmr.msrb.gmra.mxu0 %vm706_vm1, %v1514_v61 }
 0x9ff   : > { %1794 = vmatpush.bf16.msra.mxu3 %v2405_v41 }
 0xa03   : > { %1795 = vmatpush.bf16.msra.mxu3 %v2404_v45 }
 0xa07   : > { %1796 = vmatpush.bf16.msra.mxu3 %v2403_v52 }
 0xa0b   : > { %1797 = vmatpush.bf16.msra.mxu3 %v2402_v55 }
 0xa72   : > { %v1549_v62 = vpop.f32.mrf.mxu2 }
 0xa73   : > { %1592 = vrot.lane.b32.xlu2 %v1549_v62, %s3253_s29  ;;  %v1530_v63 = vpop.f32.mrf.mxu1  ;;  %v2401_v62 = vld [vmem:[%s3212_s9 + $0x40] sm:$0xff] }
 0xa74   : > { %1798 = vmatpush.bf16.msra.mxu3 %v2401_v62 }
 0xa75   : > { %v1568_v0 = vpop.f32.mrf.mxu3 }
 0xa76   : > { %1596 = vrot.lane.b32.xlu0 %v1568_v0, %s3254_s20 }
 0xa79   : > { %v1587_v1 = vpop.f32.mrf.mxu0 }
 0xa7a   : > { %v1551_v2 = vpop.f32.mrf.mxu2 }
 0xa7b   : > { %1600 = vrot.lane.b32.xlu2 %v1587_v1, %s3255_s27  ;;  %v1532_v3 = vpop.f32.mrf.mxu1 }
 0xa7d   : > { %v1570_v4 = vpop.f32.mrf.mxu3 }
 0xa81   : > { %v1589_v5 = vpop.f32.mrf.mxu0 }
 0xacd   : > { %v1593_v10 = vpop.permute.xlu2 %1592 }
 0xace   : > { %v1603_v11 = vsel %vm706_vm1, %v1530_v63, %v1593_v10 }
 0xad5   : > { %v1601_v7 = vpop.permute.xlu2 %1600 }
 0xae8   : > { %v1597_v12 = vpop.permute.xlu0 %1596 }
 0xae9   : > { %v1604_v13 = vsel %vm848_vm4, %v1603_v11, %v1597_v12 }
 0xaea   : > { %v1605_v14 = vsel %vm850_vm5, %v1604_v13, %v1601_v7  ;;  %v2412_v13 = vld [vmem:[%s3215_s12 + $0x18] sm:$0xff] }
 0xaeb   : > { %v1606_v15 = vpack.c.bf16 %v1605_v14, %v1605_v14  ;;  %1882 = vmatpush.bf16.msra.mxu0 %v2412_v13  ;;  %v2411_v14 = vld [vmem:[%s3215_s12 + $0x10] sm:$0xff] }
 0xaed   : > { %2255 = vmatmul.msk.bf16.vlgmr.msrb.gmra.mxu1 %vm852_vm6, %v1606_v15  ;;  %v2410_v15 = vld [vmem:[%s3215_s12 + $0x8] sm:$0xff] }
 0xaef   : > { %1883 = vmatpush.bf16.msra.mxu0 %v2411_v14 }
 0xaf3   : > { %1884 = vmatpush.bf16.msra.mxu0 %v2410_v15 }
 0xb6a   : > { %v1636_v16 = vpop.f32.mrf.mxu1 }
 0xb6b   : > { %v1637_v17 = vadd.f32 %v1636_v16, %v2976_v22  ;;  %v2400_v22 = vld [vmem:[%s3211_s8 + $0x38] sm:$0xff] }
 0xb6c   : > { %1715 = vmatpush.bf16.msra.mxu2 %v2400_v22 }
 0xb6d   : > { %v1644_v18 = vsel %vm557_vm0, %v1637_v17, 0.0 }
 0xb6e   : > { %1645 = vadd.xlane.f32.xlu0 %v1644_v18 }
 0xb70   : > { %1716 = vmatpush.bf16.msra.mxu2 %v2399_v26  ;;  %v2473_v26 = vld [vmem:[%s3214_s11 + $0x1] ss:$0 sm:$0xff] }
 0xb72   : > { %v1638_v19 = vpop.f32.mrf.mxu1 }
 0xb74   : > { %1717 = vmatpush.bf16.msra.mxu2 %v2398_v28 }
 0xb82   : > { %1495 = vrot.lane.b32.xlu0 %v1491_v47, %s3253_s29 }
 0xb8a   : > { %1499 = vrot.lane.b32.xlu0 %v1492_v49, %s3254_s20 }
 0xbe1   : > { %v1646_v20 = vpop.xlane.xlu0 %1645 }
 0xbe2   : > { %v1647_v38 = vmul.f32 %v1646_v20, %v2882_v8 }
 0xbe4   : > { %v1648_v21 = vsub.f32 %v1637_v17, %v1647_v38 }
 0xbe6   : > { %v1649_v23 = vmul.f32 %v1648_v21, %v1648_v21 }
 0xbe8   : > { %v1650_v24 = vsel %vm557_vm0, %v1649_v23, 0.0 }
 0xbe9   : > { %1651 = vadd.xlane.f32.xlu2 %v1650_v24  ;;  %v2472_v24 = vld [vmem:[%s3213_s10 + $0x1] ss:$0 sm:$0xff] }
 0xbf4   : > { %v1496_v35 = vpop.permute.xlu0 %1495 }
 0xbf5   : > { %v1506_v47 = vsel %vm706_vm1, %v3027_v54, %v1496_v35  ;;  %v2470_v54 = vld [vmem:[%s3209_s6 + $0x1] ss:$0 sm:$0xff] }
 0xbfc   : > { %v1500_v44 = vpop.permute.xlu0 %1499 }
 0xbfd   : > { %v1507_v48 = vsel %vm848_vm4, %v1506_v47, %v1500_v44 }
 0xc01   : > { %840 = vrot.lane.b32.xlu2 %v2845_v25, %s3254_s20  ;;  %v2397_v25 = vld [vmem:[%s3211_s8 + $0x20] sm:$0xff]  ;;  %s1898_s20 = scalar_lea.sflag [#allocation5], %s3082_s25 }
 0xc02   : > { %1718 = vmatpush.bf16.msra.mxu2 %v2397_v25 }
 0xc09   : > { %1503 = vrot.lane.b32.xlu2 %v1493_v58, %s3255_s27 }
 0xc5c   : > { %v1652_v30 = vpop.xlane.xlu2 %1651 }
 0xc5d   : > { %v1653_v31 = vmul.f32 %v1652_v30, %v2882_v8 }
 0xc5f   : > { %v1654_v36 = vadd.f32 1e-05, %v1653_v31 }
 0xc61   : > { %2513 = vrsqrt.f32 %v1654_v36  ;;  %vm1661_vm15 = vweird.f32 %v1654_v36 }
 0xc64   : > { %v3079_v39 = vpop.permute.xlu2 %840 }
 0xc67   : > { %v2514_v42 = vpop.eup %2513 }
 0xc68   : > { %v1656_v43 = vmul.f32 %v2514_v42, %v1654_v36  ;;  %vm1662_vm14 = vweird.f32 %v2514_v42 }
 0xc69   : > { %vm1663_vm2 = vmor %vm1661_vm15, %vm1662_vm14 }
 0xc6a   : > { %v1657_v46 = vmul.f32 %v2514_v42, %v1656_v43 }
 0xc6c   : > { %v1658_v49 = vmul.f32 0.5, %v1657_v46  ;;  %v1504_v50 = vpop.permute.xlu2 %1503 }
 0xc6d   : > { %v1508_v51 = vsel %vm850_vm5, %v1507_v48, %v1504_v50 }
 0xc6e   : > { %v1659_v27 = vsub.f32 1.5, %v1658_v49  ;;  %2238 = vst.msk [vmem:[%s3098_s16 + $0x8] sm:$0xff] %vm852_vm6, %v1508_v51 }
 0xc70   : > { %v1660_v53 = vmul.f32 %v2514_v42, %v1659_v27 }
 0xc72   : > { %v1664_v56 = vsel %vm1663_vm2, %v2514_v42, %v1660_v53 }
 0xc73   : > { %v1665_v58 = vmul.f32 %v1664_v56, %v1648_v21 }
 0xc75   : > { %v1669_v59 = vmul.f32 %v2470_v54, %v1665_v58 }
 0xc77   : > { %v1673_v60 = vadd.f32 %v2471_v57, %v1669_v59 }
 0xc79   : > { %v1674_v61 = vpack.c.bf16 %v1673_v60, %v1673_v60 }
 0xc7b   : > { %2282 = vmatmul.msk.bf16.vlgmr.msra.gmra.mxu2 %vm557_vm0, %v1674_v61 }
 0xcfe   : > { %v1720_v63 = vpop.f32.mrf.mxu2 }
 0xcff   : > { %v1724_v0 = vmax.f32 %v1720_v63, 0.0 }
 0xd01   : > { %v1725_v1 = vpack.c.bf16 %v1724_v0, %v1724_v0 }
 0xd03   : > { %1799 = vmatmul.bf16.vlgmr.msra.gmra.mxu3 %v1725_v1 }
 0xd06   : > { %v1722_v2 = vpop.f32.mrf.mxu2 }
 0xd86   : > { %v1800_v3 = vpop.f32.mrf.mxu3 }
 0xd87   : > { %v1801_v4 = vadd.f32 %v1800_v3, %v1673_v60 }
 0xd89   : > { %v1808_v5 = vsel %vm557_vm0, %v1801_v4, 0.0 }
 0xd8a   : > { %1809 = vadd.xlane.f32.xlu1 %v1808_v5 }
 0xd8e   : > { %v1802_v6 = vpop.f32.mrf.mxu3 }
 0xdfd   : > { %v1810_v9 = vpop.xlane.xlu1 %1809 }
 0xdfe   : > { %v1811_v10 = vmul.f32 %v1810_v9, %v2882_v8 }
 0xe00   : > { %v1812_v11 = vsub.f32 %v1801_v4, %v1811_v10 }
 0xe02   : > { %v1813_v12 = vmul.f32 %v1812_v11, %v1812_v11 }
 0xe04   : > { %v1814_v7 = vsel %vm557_vm0, %v1813_v12, 0.0 }
 0xe05   : > { %1815 = vadd.xlane.f32.xlu1 %v1814_v7 }
 0xe1e   : > { %836 = vrot.lane.b32.xlu1 %v2851_v33, %s3253_s29  ;;  %v2409_v33 = vld [vmem:[%s3215_s12] sm:$0xff] }
 0xe1f   : > { %1885 = vmatpush.bf16.msra.mxu0 %v2409_v33 }
 0xe26   : > { %844 = vrot.lane.b32.xlu1 %v2861_v40, %s3255_s27  ;;  %s1926_s27 = sshll.u32 %s1923_s17, 4  ;;  %s1927_s27 = int_to_ptr.hbm [resolvable:$true] %s1926_s27 }
 0xe27   : > { %s2531_s0 = sshra.s32 %s1927_s27, 4  ;;  %s2532_s0 = int_to_ptr.hbm [resolvable:$true] %s2531_s0 }
 0xe28   : > { %s2533_s24 = scalar_lea.hbm %s2532_s0, 16  ;;  %p2538_p0 = scmp.lt.s32.totalorder %s2532_s0, %s3218_s15 }
 0xe29   : > { %p2534_p11 = scmp.ne.s32.totalorder %s2532_s0, %s2533_s24  ;;  %p2539_p1 = scmp.lt.s32.totalorder %s2537_s3, %s2533_s24 }
 0xe2b   : > { %p2535_p12 = pnand %p2534_p11, %p2739_p5  ;;  %p2540_p2 = por %p2539_p1, %p2538_p0 }
 0xe2d   : > { %p2536_p13 = pneg %p2535_p12 }
 0xe2f   : > { %p2541_p3 = pnand %p2540_p2, %p2536_p13 }
 0xe78   : > { %v1816_v40 = vpop.xlane.xlu1 %1815 }
 0xe79   : > { %v1817_v16 = vmul.f32 %v1816_v40, %v2882_v8 }
 0xe7b   : > { %v1818_v17 = vadd.f32 1e-05, %v1817_v16 }
 0xe7d   : > { %2515 = vrsqrt.f32 %v1818_v17  ;;  %vm1825_vm7 = vweird.f32 %v1818_v17 }
 0xe83   : > { %v2516_v18 = vpop.eup %2515 }
 0xe84   : > { %v1820_v19 = vmul.f32 %v2516_v18, %v1818_v17  ;;  %vm1826_vm3 = vweird.f32 %v2516_v18 }
 0xe85   : > { %vm1827_vm8 = vmor %vm1825_vm7, %vm1826_vm3 }
 0xe86   : > { %v1821_v20 = vmul.f32 %v2516_v18, %v1820_v19 }
 0xe88   : > { %v1822_v38 = vmul.f32 0.5, %v1821_v20 }
 0xe8a   : > { %v1823_v21 = vsub.f32 1.5, %v1822_v38 }
 0xe8c   : > { %v1824_v23 = vmul.f32 %v2516_v18, %v1823_v21 }
 0xe8e   : > { %v1828_v22 = vsel %vm1827_vm8, %v2516_v18, %v1824_v23 }
 0xe8f   : > { %v1829_v8 = vmul.f32 %v1828_v22, %v1812_v11 }
 0xe90   : > { %v837_v28 = vpop.permute.xlu1 %836 }
 0xe91   : > { %v1833_v25 = vmul.f32 %v2472_v24, %v1829_v8  ;;  %v847_v30 = vsel %vm706_vm1, %v2853_v34, %v837_v28 }
 0xe92   : > { %v849_v35 = vsel %vm848_vm4, %v847_v30, %v3079_v39 }
 0xe93   : > { %v1837_v29 = vadd.f32 %v2473_v26, %v1833_v25 }
 0xe95   : > { %v1838_v31 = vpack.c.bf16 %v1837_v29, %v1837_v29 }
 0xe97   : > { %2349 = vmatmul.msk.bf16.vlgmr.msra.gmra.mxu0 %vm557_vm0, %v1838_v31 }
 0xe98   : > { %v845_v32 = vpop.permute.xlu1 %844 }
 0xe99   : > { %v851_v36 = vsel %vm850_vm5, %v849_v35, %v845_v32 }
 0xe9a   : > { %853 = vst.msk [vmem:[%s3098_s16] sm:$0xff] %vm852_vm6, %v851_v36 }
 0xe9b   : > { %2544 = shalt.err (!%p2541_p3)
}
 0xe9c   : > { %s2620_s30 = smov 128   ;;  %s2352_s23 = sshll.u32 %s2722_s22, 3  ;;  %v2474_v34 = vld [vmem:[%s3216_s13] ss:$0 sm:$0xff] }
 0xe9d   : > { %2415 = dma.vmem_to_hbm [thread:$0]  (%p2739_p5), %s1925_s18, 256, %s1927_s27, %s1898_s20, %s2620_s30, %s2620_s30, %s3253_s29  }
 0xe9e   : > { %s2038_s26 = sshll.u32 %s3082_s25, 3  ;;  %s1908_s4 = scalar_lea.hbm %s3217_s14, %s2352_s23 }
 0xe9f   : > { %s502_s0 = scalar_lea.vmem [#allocation2], %s2038_s26  ;;  %s1912_s16 = sshll.u32 %s1908_s4, 4  ;;  %s1913_s16 = int_to_ptr.hbm [resolvable:$true] %s1912_s16 }
 0xea0   : > { %s1910_s24 = sshll.u32 %s502_s0, 4  ;;  %s1893_s22 = scalar_lea.sflag [#allocation3], %s3082_s25  ;;  %s1911_s24 = int_to_ptr.vmem [resolvable:$true] %s1910_s24 }
 0xea1   : > { %s2559_s29 = sshra.s32 %s1913_s16, 4  ;;  %s2565_s30 = scalar_lea.hbm %s3217_s14, 16  ;;  %s2560_s29 = int_to_ptr.hbm [resolvable:$true] %s2559_s29 }
 0xea2   : > { %s2561_s18 = scalar_lea.hbm %s2560_s29, 8  ;;  %p2566_p9 = scmp.lt.s32.totalorder %s2560_s29, %s3217_s14 }
 0xea3   : > { %p2562_p4 = scmp.ne.s32.totalorder %s2560_s29, %s2561_s18  ;;  %p2567_p10 = scmp.lt.s32.totalorder %s2565_s30, %s2561_s18 }
 0xea5   : > { %p2563_p7 = pnand %p2562_p4, %p2739_p5  ;;  %p2568_p11 = por %p2567_p10, %p2566_p9 }
 0xea7   : > { %p2564_p8 = pneg %p2563_p7 }
 0xea9   : > { %p2569_p12 = pnand %p2568_p11, %p2564_p8 }
 0xf14   : > { %v1887_v37 = vpop.f32.mrf.mxu0 }
 0xf15   : > { %v1888_v39 = vadd.f32 %v2474_v34, %v1887_v37 }
 0xf17   : > { %1891 = vst.msk [vmem:[%s502_s0] sm:$0xff] %vm852_vm6, %v1888_v39 }
 0xf18   : > { %2572 = shalt.err (!%p2569_p12)
}
 0xf19   : > { %2414 = dma.vmem_to_hbm [thread:$0]  (%p2739_p5), %s1911_s24, 128, %s1913_s16, %s1893_s22  }
 0xf1c   : > { %v1889_v41 = vpop.f32.mrf.mxu0 }
 0xf1d PF: > { %s3256_s25 = sld [smem:[#allocation8_spill]]  ;;  %p2425_p13 = scmp.ge.s32.totalorder %s2611_s21, 2 }
 0xf1f   : > { %p2419_p0 = pnand %p2425_p13, %p2743_p6 }
 0xf21   : > { %p2420_p1 = pneg %p2419_p0 }
 0xf23   : > { %s1941_s2 = sand.u32 1, %s3256_s25  }
 0xf24   : > { %s1942_s4 = scalar_lea.sflag [#allocation3], %s1941_s2 }
 0xf25   : > { %2590 = dma.done.wait (%p2420_p1), %s1942_s4, 128  }
 0xf26   : > { %2592 = vsyncadd (%p2420_p1), %s1942_s4, 4294967168  ;;  %s1952_s17 = scalar_lea.sflag [#allocation5], %s1941_s2 }
 0xf27   : > { %2594 = dma.done.wait (%p2420_p1), %s1952_s17, 256  }
 0xf28   : > { %2596 = vsyncadd (%p2420_p1), %s1952_s17, 4294967040  ;;  %s3258_s21 = sld [smem:[#allocation10_spill]]  ;;  %s3261_s18 = smov %s2603_s19 }
 0xf29   : > { %s3259_s28 = sld [smem:[#allocation9_spill]] }
 0xf2a   : > { %s3260_s20 = sld [smem:[#allocation11_spill]] }
 0xf2e   : > { %p29_p5 = scmp.ge.s32.totalorder %s3258_s21, 4  }
 0xf2f   : > { %s3262_s19 = smov %s3259_s28 }
 0xf30   :  { %31 = sbr.rel (!%p29_p5) target bundleno = 11 (0xb), region = 142 }
 0xf35   :  { %1958 = vsyncpa [#allocation3], 1 }
 0xf36   :  { %1960 = vsyncpa [#allocation3 + $0x1], 1 }
 0xf37   :  { %1961 = vsyncpa [#allocation5], 1 }
 0xf38   :  { %1963 = vsyncpa [#allocation5 + $0x1], 1 }

</bundles_post_ra>
